<compile_context>
chip_gen: v5e
topology: v5e:2x2
jax: 0.10.0
libtpu: 0.0.40
codegen_flags: <defaults>
</compile_context>

<pallas_src>
import jax
import jax.numpy as jnp
from jax import lax
from jax.experimental import pallas as pl
from jax.experimental.pallas import tpu as pltpu


def _round_up(x, m):
    return ((x + m - 1) // m) * m


# ----------------------------------------------------------------------------
# Pallas kernels
# ----------------------------------------------------------------------------
def _matmul_bn_relu_kernel(p_ref, w_ref, s_ref, b_ref, o_ref, acc_ref):
    """Tiled GEMM (bf16 operands, f32 accumulation) + folded-BN + ReLU epilogue.

    p_ref: (tm, tk) bf16 patches    w_ref: (tk, tn) bf16 weights
    s_ref/b_ref: (1, tn) f32 per-channel scale / shift
    o_ref: (tm, tn) f32 output      acc_ref: (tm, tn) f32 accumulator
    """
    @pl.when(pl.program_id(2) == 0)
    def _init():
        acc_ref[...] = jnp.zeros_like(acc_ref)

    acc_ref[...] += jnp.dot(p_ref[...], w_ref[...],
                            preferred_element_type=jnp.float32)

    @pl.when(pl.program_id(2) == pl.num_programs(2) - 1)
    def _finalize():
        o_ref[...] = jnp.maximum(acc_ref[...] * s_ref[...] + b_ref[...], 0.0)


def _maxpool3x3s2_kernel(ee_ref, eo_ref, oe_ref, oo_ref, o_ref):
    """3x3 / stride-2 max pool built from the 4 spatial-parity planes.

    (ee, eo, oe, oo) = x[even/odd rows, even/odd cols]; every pooling tap
    x[2ho+kh, 2wo+kw] is a unit-offset slice of one of these planes.
    """
    Ho, Wo, _ = o_ref.shape
    r = ee_ref[0:Ho, 0:Wo, :]                          # tap (0, 0)
    r = jnp.maximum(r, eo_ref[0:Ho, 0:Wo, :])          # tap (0, 1)
    r = jnp.maximum(r, ee_ref[0:Ho, 1:Wo + 1, :])      # tap (0, 2)
    r = jnp.maximum(r, oe_ref[0:Ho, 0:Wo, :])          # tap (1, 0)
    r = jnp.maximum(r, oo_ref[0:Ho, 0:Wo, :])          # tap (1, 1)
    r = jnp.maximum(r, oe_ref[0:Ho, 1:Wo + 1, :])      # tap (1, 2)
    r = jnp.maximum(r, ee_ref[1:Ho + 1, 0:Wo, :])      # tap (2, 0)
    r = jnp.maximum(r, eo_ref[1:Ho + 1, 0:Wo, :])      # tap (2, 1)
    r = jnp.maximum(r, ee_ref[1:Ho + 1, 1:Wo + 1, :])  # tap (2, 2)
    o_ref[...] = r


# ----------------------------------------------------------------------------
# Tiled GEMM wrapper (padding, tiling, pallas_call)
# ----------------------------------------------------------------------------
# Max tile sizes, chosen so the double-buffered bf16 A/B tiles + f32 output +
# f32 accumulator stay around ~3 MiB: safe on v7x (64 MiB physical VMEM) and
# leaves plenty of pipelining headroom on v5e / v6e.
_TM_MAX, _TN_MAX, _TK_MAX = 512, 256, 512
_VMEM_LIMIT = 32 * 1024 * 1024   # raise v5e's 16 MiB scoped default; default elsewhere


def _gemm_tiles(M, K, Cout):
    tm = min(_TM_MAX, _round_up(M, 16))    # 16: bf16 sublane packing of the M axis
    tk = min(_TK_MAX, _round_up(K, 128))
    tn = min(_TN_MAX, _round_up(Cout, 128))
    return tm, tk, tn


def _gemm_bn_relu(patches, wmat, scale, shift):
    """out = relu((patches @ wmat) * scale + shift), tiled on the MXU."""
    M, K = patches.shape
    _, Cout = wmat.shape
    tm, tk, tn = _gemm_tiles(M, K, Cout)
    M_p, K_p, C_p = _round_up(M, tm), _round_up(K, tk), _round_up(Cout, tn)

    # Zero-pad to tile multiples (zeros contribute nothing to the dot; padded
    # output channels/rows are sliced away below), cast A/B to bf16 for MXU.
    a = jnp.pad(patches, ((0, M_p - M), (0, K_p - K))).astype(jnp.bfloat16)
    b = jnp.pad(wmat, ((0, K_p - K), (0, C_p - Cout))).astype(jnp.bfloat16)
    s = jnp.pad(scale.reshape(1, Cout).astype(jnp.float32),
                ((0, 0), (0, C_p - Cout)))
    t = jnp.pad(shift.reshape(1, Cout).astype(jnp.float32),
                ((0, 0), (0, C_p - Cout)))

    grid = (M_p // tm, C_p // tn, K_p // tk)

    out = pl.pallas_call(
        _matmul_bn_relu_kernel,
        out_shape=jax.ShapeDtypeStruct((M_p, C_p), jnp.float32),
        grid_spec=pltpu.PrefetchScalarGridSpec(
            num_scalar_prefetch=0,
            grid=grid,
            in_specs=[
                pl.BlockSpec((tm, tk), lambda i, j, k: (i, k)),
                pl.BlockSpec((tk, tn), lambda i, j, k: (k, j)),
                pl.BlockSpec((1, tn), lambda i, j, k: (0, j)),
                pl.BlockSpec((1, tn), lambda i, j, k: (0, j)),
            ],
            out_specs=pl.BlockSpec((tm, tn), lambda i, j, k: (i, j)),
            scratch_shapes=[pltpu.VMEM((tm, tn), jnp.float32)],
        ),
        compiler_params=pltpu.CompilerParams(
            dimension_semantics=("parallel", "parallel", "arbitrary"),
            vmem_limit_bytes=_VMEM_LIMIT,
        ),
        cost_estimate=pl.CostEstimate(
            flops=2 * M_p * K_p * C_p,
            transcendentals=0,
            bytes_accessed=2 * M_p * K_p + 2 * K_p * C_p + 4 * M_p * C_p,
        ),
    )(a, b, s, t)
    return out[:M, :Cout]


# ----------------------------------------------------------------------------
# Conv + BN + ReLU wrapper (im2col glue, BN folding)
# ----------------------------------------------------------------------------
def _im2col(x, ksize, stride, padding):
    """x: (N, H, W, C) -> patches (N*Ho*Wo, ksize*ksize*C)."""
    N, H, W, C = x.shape
    if padding:
        x = jnp.pad(x, ((0, 0), (padding, padding), (padding, padding), (0, 0)))
        H += 2 * padding
        W += 2 * padding
    Ho = (H - ksize) // stride + 1
    Wo = (W - ksize) // stride + 1
    cols = []
    for kh in range(ksize):
        for kw in range(ksize):
            cols.append(
                x[:, kh:kh + stride * Ho:stride, kw:kw + stride * Wo:stride, :]
            )
    patches = jnp.stack(cols, axis=3)  # (N, Ho, Wo, K*K, C)
    return patches.reshape(N * Ho * Wo, ksize * ksize * C), (N, Ho, Wo)


def conv_bn_relu(x, w, gamma, beta, mean, var, *, stride, padding, eps=1e-3):
    """x: (N,H,W,C) NHWC; w: PyTorch layout (Cout, Cin, KH, KW)."""
    Cout, Cin, KH, KW = w.shape
    N, H, W_, _ = x.shape

    if KH == 1 and KW == 1 and stride == 1 and padding == 0:
        # 1x1 conv: patches are just the flattened activations -- no im2col.
        patches, (No, Ho, Wo) = x.reshape(N * H * W_, Cin), (N, H, W_)
    else:
        patches, (No, Ho, Wo) = _im2col(x, KH, stride, padding)

    # Weight rows ordered as ((kh*KW + kw)*Cin + cin) to match im2col.
    wmat = jnp.transpose(w, (2, 3, 1, 0)).reshape(KH * KW * Cin, Cout)

    inv_std = 1.0 / jnp.sqrt(var + eps)
    scale = gamma * inv_std
    shift = beta - mean * gamma * inv_std

    out = _gemm_bn_relu(patches, wmat, scale, shift)
    return out.reshape(No, Ho, Wo, Cout)


# ----------------------------------------------------------------------------
# MaxPool2d(3, stride=2, padding=0)
# ----------------------------------------------------------------------------
def maxpool3x3_s2(x):
    """Max pool on NHWC input via spatial-parity decomposition."""
    N, H, W, C = x.shape
    Ho = (H - 3) // 2 + 1
    Wo = (W - 3) // 2 + 1

    # Four parity planes: exactly 1x the input bytes (vs 2.25x for a 9-tap
    # stack).  All 9 pooling taps become unit-offset slices in-kernel.
    ee = x[:, 0::2, 0::2, :]
    eo = x[:, 0::2, 1::2, :]
    oe = x[:, 1::2, 0::2, :]
    oo = x[:, 1::2, 1::2, :]

    def _spec(a):
        return pl.BlockSpec((None,) + a.shape[1:], lambda n: (n, 0, 0, 0))

    out = pl.pallas_call(
        _maxpool3x3s2_kernel,
        out_shape=jax.ShapeDtypeStruct((N, Ho, Wo, C), x.dtype),
        grid_spec=pltpu.PrefetchScalarGridSpec(
            num_scalar_prefetch=0,
            grid=(N,),
            in_specs=[_spec(ee), _spec(eo), _spec(oe), _spec(oo)],
            out_specs=pl.BlockSpec((None, Ho, Wo, C), lambda n: (n, 0, 0, 0)),
        ),
        compiler_params=pltpu.CompilerParams(
            dimension_semantics=("parallel",),
            vmem_limit_bytes=_VMEM_LIMIT,
        ),
        cost_estimate=pl.CostEstimate(
            flops=9 * N * Ho * Wo * C,
            transcendentals=0,
            bytes_accessed=4 * (N * H * W * C + N * Ho * Wo * C),
        ),
    )(ee, eo, oe, oo)
    return out


# ----------------------------------------------------------------------------
# Reduction_A module
# ----------------------------------------------------------------------------
def _init_conv_block(key, in_ch, out_ch, ksize):
    kw_, kg, kb, km, kv = jax.random.split(key, 5)
    fan_in = in_ch * ksize * ksize
    weight = jax.random.normal(kw_, (out_ch, in_ch, ksize, ksize), jnp.float32)
    weight = weight * (1.0 / jnp.sqrt(jnp.float32(fan_in)))
    gamma = jax.random.uniform(kg, (out_ch,), jnp.float32, 0.5, 1.5)
    beta = 0.1 * jax.random.normal(kb, (out_ch,), jnp.float32)
    mean = 0.1 * jax.random.normal(km, (out_ch,), jnp.float32)
    var = jax.random.uniform(kv, (out_ch,), jnp.float32, 0.5, 1.5)
    return dict(w=weight, gamma=gamma, beta=beta, mean=mean, var=var)


def init_reduction_a_params(key, in_channels, k, l, m, n):
    keys = jax.random.split(key, 4)
    return dict(
        branch_0=_init_conv_block(keys[0], in_channels, n, 3),
        branch_1_0=_init_conv_block(keys[1], in_channels, k, 1),
        branch_1_1=_init_conv_block(keys[2], k, l, 3),
        branch_1_2=_init_conv_block(keys[3], l, m, 3),
    )


def reduction_a_forward(x_nchw, params):
    """Input / output in NCHW to match the PyTorch module."""
    x = jnp.transpose(x_nchw, (0, 2, 3, 1))  # NCHW -> NHWC

    p = params["branch_0"]
    x0 = conv_bn_relu(x, p["w"], p["gamma"], p["beta"], p["mean"], p["var"],
                      stride=2, padding=0)

    p = params["branch_1_0"]
    x1 = conv_bn_relu(x, p["w"], p["gamma"], p["beta"], p["mean"], p["var"],
                      stride=1, padding=0)
    p = params["branch_1_1"]
    x1 = conv_bn_relu(x1, p["w"], p["gamma"], p["beta"], p["mean"], p["var"],
                      stride=1, padding=1)
    p = params["branch_1_2"]
    x1 = conv_bn_relu(x1, p["w"], p["gamma"], p["beta"], p["mean"], p["var"],
                      stride=2, padding=0)

    x2 = maxpool3x3_s2(x)

    # Channel concat (dim=1 in NCHW) kept in XLA glue: branch widths are not
    # 128-aligned in general, so a direct tiled write into the concat buffer
    # would force masked stores.
    out = jnp.concatenate([x0, x1, x2], axis=-1)
    return jnp.transpose(out, (0, 3, 1, 2))  # NHWC -> NCHW


# ----------------------------------------------------------------------------
# Pure-JAX reference (for correctness checking only).
# The conv reference uses the same bf16-operand / f32-accumulate precision as
# the Pallas GEMM so the comparison is tight.
# ----------------------------------------------------------------------------
def _ref_conv_bn_relu(x, p, stride, padding, eps=1e-3):
    w_hwio = jnp.transpose(p["w"], (2, 3, 1, 0))
    y = lax.conv_general_dilated(
        x.astype(jnp.bfloat16), w_hwio.astype(jnp.bfloat16),
        window_strides=(stride, stride),
        padding=[(padding, padding), (padding, padding)],
        dimension_numbers=("NHWC", "HWIO", "NHWC"),
        preferred_element_type=jnp.float32)
    inv_std = 1.0 / jnp.sqrt(p["var"] + eps)
    scale = p["gamma"] * inv_std
    shift = p["beta"] - p["mean"] * scale
    return jnp.maximum(y * scale + shift, 0.0)


def _ref_reduction_a(x_nchw, params):
    x = jnp.transpose(x_nchw, (0, 2, 3, 1))
    x0 = _ref_conv_bn_relu(x, params["branch_0"], 2, 0)
    x1 = _ref_conv_bn_relu(x, params["branch_1_0"], 1, 0)
    x1 = _ref_conv_bn_relu(x1, params["branch_1_1"], 1, 1)
    x1 = _ref_conv_bn_relu(x1, params["branch_1_2"], 2, 0)
    x2 = lax.reduce_window(x, -jnp.inf, lax.max, (1, 3, 3, 1), (1, 2, 2, 1), "VALID")
    out = jnp.concatenate([x0, x1, x2], axis=-1)
    return jnp.transpose(out, (0, 3, 1, 2))


# ----------------------------------------------------------------------------
if __name__ == "__main__":
    # Small shapes consistent with Reduction_A(in_channels=4, k=8, l=8, m=8, n=8)
    N, C, H, W = 2, 4, 16, 16
    k, l, m, n = 8, 8, 8, 8

    key = jax.random.PRNGKey(0)
    kx, kp = jax.random.split(key)
    x = jax.random.normal(kx, (N, C, H, W), jnp.float32)
    params = init_reduction_a_params(kp, C, k, l, m, n)

    out = jax.jit(reduction_a_forward)(x, params)
    out = jax.block_until_ready(out)

    expected_shape = (N, n + m + C, (H - 3) // 2 + 1, (W - 3) // 2 + 1)
    assert out.shape == expected_shape, (out.shape, expected_shape)

    ref = jax.jit(_ref_reduction_a)(x, params)
    ref = jax.block_until_ready(ref)
    max_err = float(jnp.max(jnp.abs(out - ref)))
    assert jnp.allclose(out, ref, atol=5e-3, rtol=5e-3), max_err

    print("KERNEL_OK")
</pallas_src>

<mosaic_0001>
module attributes {stable_mosaic.version = 11 : i64} {
  func.func @_maxpool3x3s2_kernel(%arg0: i32, %arg1: memref<1x8x8x4xf32, #tpu.memory_space<vmem>>, %arg2: memref<1x8x8x4xf32, #tpu.memory_space<vmem>>, %arg3: memref<1x8x8x4xf32, #tpu.memory_space<vmem>>, %arg4: memref<1x8x8x4xf32, #tpu.memory_space<vmem>>, %arg5: memref<1x7x7x4xf32, #tpu.memory_space<vmem>>) attributes {dimension_semantics = [#tpu.dimension_semantics<parallel>], iteration_bounds = array<i64: 2>, scalar_prefetch = 0 : i64, scratch_operands = 0 : i64, tpu.core_type = #tpu.core_type<tc>, window_params = [{transform_indices = @transform_0, window_bounds = array<i64: 1, 8, 8, 4>}, {transform_indices = @transform_1, window_bounds = array<i64: 1, 8, 8, 4>}, {transform_indices = @transform_2, window_bounds = array<i64: 1, 8, 8, 4>}, {transform_indices = @transform_3, window_bounds = array<i64: 1, 8, 8, 4>}, {transform_indices = @transform_4, window_bounds = array<i64: 1, 7, 7, 4>}]} {
    %c0 = arith.constant 0 : index
    %c0_0 = arith.constant 0 : index
    %c0_1 = arith.constant 0 : index
    %c0_2 = arith.constant 0 : index
    %0 = vector.load %arg1[%c0, %c0_0, %c0_1, %c0_2] : memref<1x8x8x4xf32, #tpu.memory_space<vmem>>, vector<1x7x7x4xf32>
    %1 = vector.shape_cast %0 : vector<1x7x7x4xf32> to vector<7x7x4xf32>
    %c0_3 = arith.constant 0 : index
    %c0_4 = arith.constant 0 : index
    %c0_5 = arith.constant 0 : index
    %c0_6 = arith.constant 0 : index
    %2 = vector.load %arg2[%c0_3, %c0_4, %c0_5, %c0_6] : memref<1x8x8x4xf32, #tpu.memory_space<vmem>>, vector<1x7x7x4xf32>
    %3 = vector.shape_cast %2 : vector<1x7x7x4xf32> to vector<7x7x4xf32>
    %4 = arith.maximumf %1, %3 : vector<7x7x4xf32>
    %c0_7 = arith.constant 0 : index
    %c0_8 = arith.constant 0 : index
    %c1 = arith.constant 1 : index
    %c0_9 = arith.constant 0 : index
    %5 = vector.load %arg1[%c0_7, %c0_8, %c1, %c0_9] : memref<1x8x8x4xf32, #tpu.memory_space<vmem>>, vector<1x7x7x4xf32>
    %6 = vector.shape_cast %5 : vector<1x7x7x4xf32> to vector<7x7x4xf32>
    %7 = arith.maximumf %4, %6 : vector<7x7x4xf32>
    %c0_10 = arith.constant 0 : index
    %c0_11 = arith.constant 0 : index
    %c0_12 = arith.constant 0 : index
    %c0_13 = arith.constant 0 : index
    %8 = vector.load %arg3[%c0_10, %c0_11, %c0_12, %c0_13] : memref<1x8x8x4xf32, #tpu.memory_space<vmem>>, vector<1x7x7x4xf32>
    %9 = vector.shape_cast %8 : vector<1x7x7x4xf32> to vector<7x7x4xf32>
    %10 = arith.maximumf %7, %9 : vector<7x7x4xf32>
    %c0_14 = arith.constant 0 : index
    %c0_15 = arith.constant 0 : index
    %c0_16 = arith.constant 0 : index
    %c0_17 = arith.constant 0 : index
    %11 = vector.load %arg4[%c0_14, %c0_15, %c0_16, %c0_17] : memref<1x8x8x4xf32, #tpu.memory_space<vmem>>, vector<1x7x7x4xf32>
    %12 = vector.shape_cast %11 : vector<1x7x7x4xf32> to vector<7x7x4xf32>
    %13 = arith.maximumf %10, %12 : vector<7x7x4xf32>
    %c0_18 = arith.constant 0 : index
    %c0_19 = arith.constant 0 : index
    %c1_20 = arith.constant 1 : index
    %c0_21 = arith.constant 0 : index
    %14 = vector.load %arg3[%c0_18, %c0_19, %c1_20, %c0_21] : memref<1x8x8x4xf32, #tpu.memory_space<vmem>>, vector<1x7x7x4xf32>
    %15 = vector.shape_cast %14 : vector<1x7x7x4xf32> to vector<7x7x4xf32>
    %16 = arith.maximumf %13, %15 : vector<7x7x4xf32>
    %c0_22 = arith.constant 0 : index
    %c1_23 = arith.constant 1 : index
    %c0_24 = arith.constant 0 : index
    %c0_25 = arith.constant 0 : index
    %17 = vector.load %arg1[%c0_22, %c1_23, %c0_24, %c0_25] : memref<1x8x8x4xf32, #tpu.memory_space<vmem>>, vector<1x7x7x4xf32>
    %18 = vector.shape_cast %17 : vector<1x7x7x4xf32> to vector<7x7x4xf32>
    %19 = arith.maximumf %16, %18 : vector<7x7x4xf32>
    %c0_26 = arith.constant 0 : index
    %c1_27 = arith.constant 1 : index
    %c0_28 = arith.constant 0 : index
    %c0_29 = arith.constant 0 : index
    %20 = vector.load %arg2[%c0_26, %c1_27, %c0_28, %c0_29] : memref<1x8x8x4xf32, #tpu.memory_space<vmem>>, vector<1x7x7x4xf32>
    %21 = vector.shape_cast %20 : vector<1x7x7x4xf32> to vector<7x7x4xf32>
    %22 = arith.maximumf %19, %21 : vector<7x7x4xf32>
    %c0_30 = arith.constant 0 : index
    %c1_31 = arith.constant 1 : index
    %c1_32 = arith.constant 1 : index
    %c0_33 = arith.constant 0 : index
    %23 = vector.load %arg1[%c0_30, %c1_31, %c1_32, %c0_33] : memref<1x8x8x4xf32, #tpu.memory_space<vmem>>, vector<1x7x7x4xf32>
    %24 = vector.shape_cast %23 : vector<1x7x7x4xf32> to vector<7x7x4xf32>
    %25 = arith.maximumf %22, %24 : vector<7x7x4xf32>
    %c0_34 = arith.constant 0 : index
    %c0_35 = arith.constant 0 : index
    %c0_36 = arith.constant 0 : index
    %c0_37 = arith.constant 0 : index
    %26 = vector.load %arg5[%c0_34, %c0_35, %c0_36, %c0_37] : memref<1x7x7x4xf32, #tpu.memory_space<vmem>>, vector<1x7x7x4xf32>
    %27 = vector.shape_cast %26 : vector<1x7x7x4xf32> to vector<7x7x4xf32>
    %28 = vector.shape_cast %25 : vector<7x7x4xf32> to vector<1x7x7x4xf32>
    tpu.vector_store %arg5[%c0_34, %c0_35, %c0_36, %c0_37], %28 {strides = array<i32>} : memref<1x7x7x4xf32, #tpu.memory_space<vmem>>, vector<1x7x7x4xf32>,
    return
  }
  func.func @transform_0(%arg0: i32) -> (i32, i32, i32, i32) {
    %c0_i32 = arith.constant 0 : i32
    %c0_i32_0 = arith.constant 0 : i32
    %c0_i32_1 = arith.constant 0 : i32
    %c0_i32_2 = arith.constant 0 : i32
    return %arg0, %c0_i32, %c0_i32_0, %c0_i32_1 : i32, i32, i32, i32
  }
  func.func @transform_1(%arg0: i32) -> (i32, i32, i32, i32) {
    %c0_i32 = arith.constant 0 : i32
    %c0_i32_0 = arith.constant 0 : i32
    %c0_i32_1 = arith.constant 0 : i32
    %c0_i32_2 = arith.constant 0 : i32
    return %arg0, %c0_i32, %c0_i32_0, %c0_i32_1 : i32, i32, i32, i32
  }
  func.func @transform_2(%arg0: i32) -> (i32, i32, i32, i32) {
    %c0_i32 = arith.constant 0 : i32
    %c0_i32_0 = arith.constant 0 : i32
    %c0_i32_1 = arith.constant 0 : i32
    %c0_i32_2 = arith.constant 0 : i32
    return %arg0, %c0_i32, %c0_i32_0, %c0_i32_1 : i32, i32, i32, i32
  }
  func.func @transform_3(%arg0: i32) -> (i32, i32, i32, i32) {
    %c0_i32 = arith.constant 0 : i32
    %c0_i32_0 = arith.constant 0 : i32
    %c0_i32_1 = arith.constant 0 : i32
    %c0_i32_2 = arith.constant 0 : i32
    return %arg0, %c0_i32, %c0_i32_0, %c0_i32_1 : i32, i32, i32, i32
  }
  func.func @transform_4(%arg0: i32) -> (i32, i32, i32, i32) {
    %c0_i32 = arith.constant 0 : i32
    %c0_i32_0 = arith.constant 0 : i32
    %c0_i32_1 = arith.constant 0 : i32
    %c0_i32_2 = arith.constant 0 : i32
    return %arg0, %c0_i32, %c0_i32_0, %c0_i32_1 : i32, i32, i32, i32
  }
}

module attributes {stable_mosaic.version = 11 : i64} {
  func.func @_matmul_bn_relu_kernel(%arg0: i32, %arg1: i32, %arg2: i32, %arg3: memref<512x128xbf16, #tpu.memory_space<vmem>>, %arg4: memref<128x128xbf16, #tpu.memory_space<vmem>>, %arg5: memref<1x128xf32, #tpu.memory_space<vmem>>, %arg6: memref<1x128xf32, #tpu.memory_space<vmem>>, %arg7: memref<512x128xf32, #tpu.memory_space<vmem>>, %arg8: memref<512x128xf32, #tpu.memory_space<vmem>>) attributes {dimension_semantics = [#tpu.dimension_semantics<parallel>, #tpu.dimension_semantics<parallel>, #tpu.dimension_semantics<arbitrary>], iteration_bounds = array<i64: 1, 1, 1>, scalar_prefetch = 0 : i64, scratch_operands = 1 : i64, tpu.core_type = #tpu.core_type<tc>, window_params = [{transform_indices = @transform_0, window_bounds = array<i64: 512, 128>}, {transform_indices = @transform_1, window_bounds = array<i64: 128, 128>}, {transform_indices = @transform_2, window_bounds = array<i64: 1, 128>}, {transform_indices = @transform_3, window_bounds = array<i64: 1, 128>}, {transform_indices = @transform_4, window_bounds = array<i64: 512, 128>}]} {
    %c0_i32 = arith.constant 0 : i32
    %0 = arith.cmpi eq, %arg2, %c0_i32 : i32
    %1 = arith.extui %0 : i1 to i32
    %c0_i32_0 = arith.constant 0 : i32
    %2 = arith.cmpi ne, %1, %c0_i32_0 : i32
    scf.if %2 {
      %cst_10 = arith.constant 0.000000e+00 : f32
      %12 = vector.broadcast %cst_10 : f32 to vector<512x128xf32>
      %c0_11 = arith.constant 0 : index
      %c0_12 = arith.constant 0 : index
      %13 = vector.load %arg8[%c0_11, %c0_12] : memref<512x128xf32, #tpu.memory_space<vmem>>, vector<512x128xf32>
      tpu.vector_store %arg8[%c0_11, %c0_12], %12 {strides = array<i32>} : memref<512x128xf32, #tpu.memory_space<vmem>>, vector<512x128xf32>,
    } else {
    }
    %c0 = arith.constant 0 : index
    %c0_1 = arith.constant 0 : index
    %3 = vector.load %arg8[%c0, %c0_1] : memref<512x128xf32, #tpu.memory_space<vmem>>, vector<512x128xf32>
    %c0_2 = arith.constant 0 : index
    %c0_3 = arith.constant 0 : index
    %4 = vector.load %arg3[%c0_2, %c0_3] : memref<512x128xbf16, #tpu.memory_space<vmem>>, vector<512x128xbf16>
    %c0_4 = arith.constant 0 : index
    %c0_5 = arith.constant 0 : index
    %5 = vector.load %arg4[%c0_4, %c0_5] : memref<128x128xbf16, #tpu.memory_space<vmem>>, vector<128x128xbf16>
    %cst = arith.constant dense<0.000000e+00> : vector<512x128xf32>
    %6 = tpu.matmul %4, %5, %cst {dimension_numbers = #tpu.dot_dimension_numbers<[1], [0], [0], [1], [0, 0, 1, 1], [], []>} : vector<512x128xbf16>, vector<128x128xbf16>, vector<512x128xf32> -> vector<512x128xf32>
    %7 = arith.addf %3, %6 : vector<512x128xf32>
    %c0_6 = arith.constant 0 : index
    %c0_7 = arith.constant 0 : index
    %8 = vector.load %arg8[%c0_6, %c0_7] : memref<512x128xf32, #tpu.memory_space<vmem>>, vector<512x128xf32>
    tpu.vector_store %arg8[%c0_6, %c0_7], %7 {strides = array<i32>} : memref<512x128xf32, #tpu.memory_space<vmem>>, vector<512x128xf32>,
    %c0_i32_8 = arith.constant 0 : i32
    %9 = arith.cmpi eq, %arg2, %c0_i32_8 : i32
    %10 = arith.extui %9 : i1 to i32
    %c0_i32_9 = arith.constant 0 : i32
    %11 = arith.cmpi ne, %10, %c0_i32_9 : i32
    scf.if %11 {
      %c0_10 = arith.constant 0 : index
      %c0_11 = arith.constant 0 : index
      %12 = vector.load %arg8[%c0_10, %c0_11] : memref<512x128xf32, #tpu.memory_space<vmem>>, vector<512x128xf32>
      %c0_12 = arith.constant 0 : index
      %c0_13 = arith.constant 0 : index
      %13 = vector.load %arg5[%c0_12, %c0_13] : memref<1x128xf32, #tpu.memory_space<vmem>>, vector<1x128xf32>
      %14 = vector.broadcast %13 : vector<1x128xf32> to vector<512x128xf32>
      %15 = arith.mulf %12, %14 : vector<512x128xf32>
      %c0_14 = arith.constant 0 : index
      %c0_15 = arith.constant 0 : index
      %16 = vector.load %arg6[%c0_14, %c0_15] : memref<1x128xf32, #tpu.memory_space<vmem>>, vector<1x128xf32>
      %17 = vector.broadcast %16 : vector<1x128xf32> to vector<512x128xf32>
      %18 = arith.addf %15, %17 : vector<512x128xf32>
      %cst_16 = arith.constant 0.000000e+00 : f32
      %19 = vector.broadcast %cst_16 : f32 to vector<512x128xf32>
      %20 = arith.maximumf %18, %19 : vector<512x128xf32>
      %c0_17 = arith.constant 0 : index
      %c0_18 = arith.constant 0 : index
      %21 = vector.load %arg7[%c0_17, %c0_18] : memref<512x128xf32, #tpu.memory_space<vmem>>, vector<512x128xf32>
      tpu.vector_store %arg7[%c0_17, %c0_18], %20 {strides = array<i32>} : memref<512x128xf32, #tpu.memory_space<vmem>>, vector<512x128xf32>,
    } else {
    }
    return
  }
  func.func @transform_0(%arg0: i32, %arg1: i32, %arg2: i32) -> (i32, i32) {
    %c0_i32 = arith.constant 0 : i32
    return %arg0, %arg2 : i32, i32
  }
  func.func @transform_1(%arg0: i32, %arg1: i32, %arg2: i32) -> (i32, i32) {
    %c0_i32 = arith.constant 0 : i32
    return %arg2, %arg1 : i32, i32
  }
  func.func @transform_2(%arg0: i32, %arg1: i32, %arg2: i32) -> (i32, i32) {
    %c0_i32 = arith.constant 0 : i32
    %c0_i32_0 = arith.constant 0 : i32
    return %c0_i32, %arg1 : i32, i32
  }
  func.func @transform_3(%arg0: i32, %arg1: i32, %arg2: i32) -> (i32, i32) {
    %c0_i32 = arith.constant 0 : i32
    %c0_i32_0 = arith.constant 0 : i32
    return %c0_i32, %arg1 : i32, i32
  }
  func.func @transform_4(%arg0: i32, %arg1: i32, %arg2: i32) -> (i32, i32) {
    %c0_i32 = arith.constant 0 : i32
    return %arg0, %arg1 : i32, i32
  }
}

module attributes {stable_mosaic.version = 11 : i64} {
  func.func @_matmul_bn_relu_kernel(%arg0: i32, %arg1: i32, %arg2: i32, %arg3: memref<112x128xbf16, #tpu.memory_space<vmem>>, %arg4: memref<128x128xbf16, #tpu.memory_space<vmem>>, %arg5: memref<1x128xf32, #tpu.memory_space<vmem>>, %arg6: memref<1x128xf32, #tpu.memory_space<vmem>>, %arg7: memref<112x128xf32, #tpu.memory_space<vmem>>, %arg8: memref<112x128xf32, #tpu.memory_space<vmem>>) attributes {dimension_semantics = [#tpu.dimension_semantics<parallel>, #tpu.dimension_semantics<parallel>, #tpu.dimension_semantics<arbitrary>], iteration_bounds = array<i64: 1, 1, 1>, scalar_prefetch = 0 : i64, scratch_operands = 1 : i64, tpu.core_type = #tpu.core_type<tc>, window_params = [{transform_indices = @transform_0, window_bounds = array<i64: 112, 128>}, {transform_indices = @transform_1, window_bounds = array<i64: 128, 128>}, {transform_indices = @transform_2, window_bounds = array<i64: 1, 128>}, {transform_indices = @transform_3, window_bounds = array<i64: 1, 128>}, {transform_indices = @transform_4, window_bounds = array<i64: 112, 128>}]} {
    %c0_i32 = arith.constant 0 : i32
    %0 = arith.cmpi eq, %arg2, %c0_i32 : i32
    %1 = arith.extui %0 : i1 to i32
    %c0_i32_0 = arith.constant 0 : i32
    %2 = arith.cmpi ne, %1, %c0_i32_0 : i32
    scf.if %2 {
      %cst_10 = arith.constant 0.000000e+00 : f32
      %12 = vector.broadcast %cst_10 : f32 to vector<112x128xf32>
      %c0_11 = arith.constant 0 : index
      %c0_12 = arith.constant 0 : index
      %13 = vector.load %arg8[%c0_11, %c0_12] : memref<112x128xf32, #tpu.memory_space<vmem>>, vector<112x128xf32>
      tpu.vector_store %arg8[%c0_11, %c0_12], %12 {strides = array<i32>} : memref<112x128xf32, #tpu.memory_space<vmem>>, vector<112x128xf32>,
    } else {
    }
    %c0 = arith.constant 0 : index
    %c0_1 = arith.constant 0 : index
    %3 = vector.load %arg8[%c0, %c0_1] : memref<112x128xf32, #tpu.memory_space<vmem>>, vector<112x128xf32>
    %c0_2 = arith.constant 0 : index
    %c0_3 = arith.constant 0 : index
    %4 = vector.load %arg3[%c0_2, %c0_3] : memref<112x128xbf16, #tpu.memory_space<vmem>>, vector<112x128xbf16>
    %c0_4 = arith.constant 0 : index
    %c0_5 = arith.constant 0 : index
    %5 = vector.load %arg4[%c0_4, %c0_5] : memref<128x128xbf16, #tpu.memory_space<vmem>>, vector<128x128xbf16>
    %cst = arith.constant dense<0.000000e+00> : vector<112x128xf32>
    %6 = tpu.matmul %4, %5, %cst {dimension_numbers = #tpu.dot_dimension_numbers<[1], [0], [0], [1], [0, 0, 1, 1], [], []>} : vector<112x128xbf16>, vector<128x128xbf16>, vector<112x128xf32> -> vector<112x128xf32>
    %7 = arith.addf %3, %6 : vector<112x128xf32>
    %c0_6 = arith.constant 0 : index
    %c0_7 = arith.constant 0 : index
    %8 = vector.load %arg8[%c0_6, %c0_7] : memref<112x128xf32, #tpu.memory_space<vmem>>, vector<112x128xf32>
    tpu.vector_store %arg8[%c0_6, %c0_7], %7 {strides = array<i32>} : memref<112x128xf32, #tpu.memory_space<vmem>>, vector<112x128xf32>,
    %c0_i32_8 = arith.constant 0 : i32
    %9 = arith.cmpi eq, %arg2, %c0_i32_8 : i32
    %10 = arith.extui %9 : i1 to i32
    %c0_i32_9 = arith.constant 0 : i32
    %11 = arith.cmpi ne, %10, %c0_i32_9 : i32
    scf.if %11 {
      %c0_10 = arith.constant 0 : index
      %c0_11 = arith.constant 0 : index
      %12 = vector.load %arg8[%c0_10, %c0_11] : memref<112x128xf32, #tpu.memory_space<vmem>>, vector<112x128xf32>
      %c0_12 = arith.constant 0 : index
      %c0_13 = arith.constant 0 : index
      %13 = vector.load %arg5[%c0_12, %c0_13] : memref<1x128xf32, #tpu.memory_space<vmem>>, vector<1x128xf32>
      %14 = vector.broadcast %13 : vector<1x128xf32> to vector<112x128xf32>
      %15 = arith.mulf %12, %14 : vector<112x128xf32>
      %c0_14 = arith.constant 0 : index
      %c0_15 = arith.constant 0 : index
      %16 = vector.load %arg6[%c0_14, %c0_15] : memref<1x128xf32, #tpu.memory_space<vmem>>, vector<1x128xf32>
      %17 = vector.broadcast %16 : vector<1x128xf32> to vector<112x128xf32>
      %18 = arith.addf %15, %17 : vector<112x128xf32>
      %cst_16 = arith.constant 0.000000e+00 : f32
      %19 = vector.broadcast %cst_16 : f32 to vector<112x128xf32>
      %20 = arith.maximumf %18, %19 : vector<112x128xf32>
      %c0_17 = arith.constant 0 : index
      %c0_18 = arith.constant 0 : index
      %21 = vector.load %arg7[%c0_17, %c0_18] : memref<112x128xf32, #tpu.memory_space<vmem>>, vector<112x128xf32>
      tpu.vector_store %arg7[%c0_17, %c0_18], %20 {strides = array<i32>} : memref<112x128xf32, #tpu.memory_space<vmem>>, vector<112x128xf32>,
    } else {
    }
    return
  }
  func.func @transform_0(%arg0: i32, %arg1: i32, %arg2: i32) -> (i32, i32) {
    %c0_i32 = arith.constant 0 : i32
    return %arg0, %arg2 : i32, i32
  }
  func.func @transform_1(%arg0: i32, %arg1: i32, %arg2: i32) -> (i32, i32) {
    %c0_i32 = arith.constant 0 : i32
    return %arg2, %arg1 : i32, i32
  }
  func.func @transform_2(%arg0: i32, %arg1: i32, %arg2: i32) -> (i32, i32) {
    %c0_i32 = arith.constant 0 : i32
    %c0_i32_0 = arith.constant 0 : i32
    return %c0_i32, %arg1 : i32, i32
  }
  func.func @transform_3(%arg0: i32, %arg1: i32, %arg2: i32) -> (i32, i32) {
    %c0_i32 = arith.constant 0 : i32
    %c0_i32_0 = arith.constant 0 : i32
    return %c0_i32, %arg1 : i32, i32
  }
  func.func @transform_4(%arg0: i32, %arg1: i32, %arg2: i32) -> (i32, i32) {
    %c0_i32 = arith.constant 0 : i32
    return %arg0, %arg1 : i32, i32
  }
}

</mosaic_0001>

<bundles_post_ra>
// kernel: reduction_a_forward.9
= control target key start
LH: loop header
LB: loop body
LE: loop exit
PB: predicated region body
PF: predicated region fallthrough
CT: control target
= control target key end

     0   :  { %s561_s15 = smov 0   ;;  %s680_s0 = inlined_call_operand.vmem [shape: f32[2,8,8,4], index: 0, kind: input, shape index: {}]   ;;  %s681_s1 = inlined_call_operand.vmem [shape: f32[2,8,8,4], index: 1, kind: input, shape index: {}]   ;;  %s682_s2 = inlined_call_operand.vmem [shape: f32[2,8,8,4], index: 2, kind: input, shape index: {}]   ;;  %s683_s3 = inlined_call_operand.vmem [shape: f32[2,8,8,4], index: 3, kind: input, shape index: {}]   ;;  %s684_s4 = inlined_call_operand.vmem [shape: f32[2,7,7,4], index: 4, kind: output, shape index: {}]  }
   0x1 LB: > { %s478_s16 = sadd.s32 4294967295, %s534_s15   ;;  %p482_p0 = scmp.ge.s32.totalorder %s534_s15, 1  ;;  %s534_s15 = sphi %s561_s15, %s14_s15  }
   0x2   : > { %p192_p1 = scmp.lt.s32.totalorder %s534_s15, 3 }
   0x4   : > { %p193_p2 = pnand %p482_p0, %p192_p1 }
   0x5   : > { %p233_p3 = scmp.lt.s32.totalorder (!%p193_p2), %s478_s16, 1 }
   0x6   : > { %196 = sbr.rel (%p193_p2) target bundleno = 47 (0x2f), region = 36 }
   0xb   : > { %s686_s16 = smov (!%p233_p3, %s478_s16), 1  ;;  %vm379_vm0 = vcmask 30720  }
   0xc   : > { %s515_s17 = sshll.u32 %s686_s16, 6  ;;  %s519_s30 = smul.u32 56, %s686_s16 }
   0xd   : > { %s575_s20 = scalar_lea.vmem %s680_s0, %s515_s17  ;;  %s580_s23 = scalar_lea.vmem %s681_s1, %s515_s17 }
   0xe   : > { %s585_s26 = scalar_lea.vmem %s682_s2, %s515_s17  ;;  %v258_v0 = vld [vmem:[%s575_s20] sm:$0x7f]  ;;  %s593_s29 = scalar_lea.vmem %s683_s3, %s515_s17  ;;  %v259_v6 = vld [vmem:[%s575_s20 + $0x8] sm:$0x7f]  ;;  %v260_v15 = vld [vmem:[%s575_s20 + $0x10] sm:$0x7f] }
   0xf   : > { %v265_v1 = vld [vmem:[%s580_s23] sm:$0x7f]  ;;  %v266_v7 = vld [vmem:[%s580_s23 + $0x8] sm:$0x7f]  ;;  %v267_v16 = vld [vmem:[%s580_s23 + $0x10] sm:$0x7f]  ;;  %s630_s7 = scalar_lea.vmem %s684_s4, %s519_s30 }
  0x10   : > { %v279_v2 = vld [vmem:[%s575_s20 + $0x1] sm:$0x7f]  ;;  %v272_v3 = vmax.f32 %v258_v0, %v265_v1  ;;  %v280_v8 = vld [vmem:[%s575_s20 + $0x9] sm:$0x7f]  ;;  %v273_v10 = vmax.f32 %v259_v6, %v266_v7  ;;  %v281_v17 = vld [vmem:[%s575_s20 + $0x11] sm:$0x7f]  ;;  %v274_v20 = vmax.f32 %v260_v15, %v267_v16 }
  0x11   : > { %v293_v4 = vld [vmem:[%s585_s26] sm:$0x7f]  ;;  %v294_v13 = vld [vmem:[%s585_s26 + $0x8] sm:$0x7f]  ;;  %v295_v24 = vld [vmem:[%s585_s26 + $0x10] sm:$0x7f] }
  0x12   : > { %v286_v5 = vmax.f32 %v272_v3, %v279_v2  ;;  %v307_v9 = vld [vmem:[%s593_s29] sm:$0x7f]  ;;  %v287_v14 = vmax.f32 %v273_v10, %v280_v8  ;;  %v308_v19 = vld [vmem:[%s593_s29 + $0x8] sm:$0x7f]  ;;  %v288_v26 = vmax.f32 %v274_v20, %v281_v17  ;;  %v261_v27 = vld [vmem:[%s575_s20 + $0x18] sm:$0x7f] }
  0x13   : > { %v321_v12 = vld [vmem:[%s585_s26 + $0x1] sm:$0x7f]  ;;  %v492_v21 = vld [vmem:[%s575_s20 + $0x8] sm:$0x7f]  ;;  %v268_v28 = vld [vmem:[%s580_s23 + $0x18] sm:$0x7f] }
  0x14   : > { %v300_v11 = vmax.f32 %v286_v5, %v293_v4  ;;  %v301_v22 = vmax.f32 %v287_v14, %v294_v13  ;;  %v322_v23 = vld [vmem:[%s585_s26 + $0x9] sm:$0x7f]  ;;  %v282_v29 = vld [vmem:[%s575_s20 + $0x19] sm:$0x7f]  ;;  %v309_v33 = vld [vmem:[%s593_s29 + $0x10] sm:$0x7f]  ;;  %v275_v34 = vmax.f32 %v261_v27, %v268_v28  ;;  %v302_v37 = vmax.f32 %v288_v26, %v295_v24 }
  0x15   : > { %v499_v30 = vld [vmem:[%s580_s23 + $0x8] sm:$0x7f]  ;;  %v493_v36 = vld [vmem:[%s575_s20 + $0x10] sm:$0x7f]  ;;  %v296_v39 = vld [vmem:[%s585_s26 + $0x18] sm:$0x7f] }
  0x16   : > { %v314_v18 = vmax.f32 %v300_v11, %v307_v9  ;;  %v506_v31 = vld [vmem:[%s575_s20 + $0x9] sm:$0x7f]  ;;  %v315_v32 = vmax.f32 %v301_v22, %v308_v19  ;;  %v323_v38 = vld [vmem:[%s585_s26 + $0x11] sm:$0x7f]  ;;  %v289_v41 = vmax.f32 %v275_v34, %v282_v29  ;;  %v262_v42 = vld [vmem:[%s575_s20 + $0x20] sm:$0x7f]  ;;  %v316_v48 = vmax.f32 %v302_v37, %v309_v33 }
  0x17   : > { %v269_v43 = vld [vmem:[%s580_s23 + $0x20] sm:$0x7f]  ;;  %v500_v46 = vld [vmem:[%s580_s23 + $0x10] sm:$0x7f]  ;;  %v310_v49 = vld [vmem:[%s593_s29 + $0x18] sm:$0x7f] }
  0x18   : > { %v328_v25 = vmax.f32 %v314_v18, %v321_v12  ;;  %v329_v40 = vmax.f32 %v315_v32, %v322_v23  ;;  %v283_v44 = vld [vmem:[%s575_s20 + $0x21] sm:$0x7f]  ;;  %v507_v47 = vld [vmem:[%s575_s20 + $0x11] sm:$0x7f]  ;;  %v276_v50 = vmax.f32 %v262_v42, %v269_v43  ;;  %v494_v52 = vld [vmem:[%s575_s20 + $0x18] sm:$0x7f]  ;;  %v303_v53 = vmax.f32 %v289_v41, %v296_v39 }
  0x19   : > { %v324_v54 = vld [vmem:[%s585_s26 + $0x19] sm:$0x7f]  ;;  %v297_v55 = vld [vmem:[%s585_s26 + $0x20] sm:$0x7f]  ;;  %v330_v57 = vmax.f32 %v316_v48, %v323_v38  ;;  %v263_v59 = vld [vmem:[%s575_s20 + $0x28] sm:$0x7f] }
  0x1a   : > { %v343_v35 = vmax.f32 %v328_v25, %v492_v21  ;;  %v344_v51 = vmax.f32 %v329_v40, %v493_v36  ;;  %v290_v58 = vmax.f32 %v276_v50, %v283_v44  ;;  %v270_v60 = vld [vmem:[%s580_s23 + $0x28] sm:$0x7f]  ;;  %v501_v63 = vld [vmem:[%s580_s23 + $0x18] sm:$0x7f]  ;;  %v317_v1 = vmax.f32 %v303_v53, %v310_v49  ;;  %v311_v2 = vld [vmem:[%s593_s29 + $0x20] sm:$0x7f] }
  0x1b   : > { %v284_v61 = vld [vmem:[%s575_s20 + $0x29] sm:$0x7f]  ;;  %v508_v0 = vld [vmem:[%s575_s20 + $0x19] sm:$0x7f]  ;;  %v277_v3 = vmax.f32 %v263_v59, %v270_v60  ;;  %v345_v4 = vmax.f32 %v330_v57, %v494_v52  ;;  %v495_v5 = vld [vmem:[%s575_s20 + $0x20] sm:$0x7f] }
  0x1c   : > { %v358_v45 = vmax.f32 %v343_v35, %v499_v30  ;;  %v359_v62 = vmax.f32 %v344_v51, %v500_v46  ;;  %v304_v6 = vmax.f32 %v290_v58, %v297_v55  ;;  %v298_v7 = vld [vmem:[%s585_s26 + $0x28] sm:$0x7f]  ;;  %v331_v9 = vmax.f32 %v317_v1, %v324_v54  ;;  %v325_v10 = vld [vmem:[%s585_s26 + $0x21] sm:$0x7f]  ;;  %v264_v12 = vld [vmem:[%s575_s20 + $0x30] sm:$0x7f] }
  0x1d   : > { %v291_v11 = vmax.f32 %v277_v3, %v284_v61  ;;  %v271_v13 = vld [vmem:[%s580_s23 + $0x30] sm:$0x7f]  ;;  %v360_v14 = vmax.f32 %v345_v4, %v501_v63  ;;  %v502_v15 = vld [vmem:[%s580_s23 + $0x20] sm:$0x7f]  ;;  %v312_v17 = vld [vmem:[%s593_s29 + $0x28] sm:$0x7f] }
  0x1e   : > { %v372_v56 = vmax.f32 %v358_v45, %v506_v31  ;;  %v373_v8 = vmax.f32 %v359_v62, %v507_v47  ;;  %v318_v16 = vmax.f32 %v304_v6, %v311_v2  ;;  %v278_v18 = vmax.f32 %v264_v12, %v271_v13  ;;  %v285_v19 = vld [vmem:[%s575_s20 + $0x31] sm:$0x7f]  ;;  %v496_v21 = vld [vmem:[%s575_s20 + $0x28] sm:$0x7f]  ;;  %v509_v25 = vld [vmem:[%s575_s20 + $0x21] sm:$0x7f] }
  0x1f   : > { %v346_v20 = vmax.f32 %v331_v9, %v495_v5  ;;  %v305_v22 = vmax.f32 %v291_v11, %v298_v7  ;;  %v299_v23 = vld [vmem:[%s585_s26 + $0x30] sm:$0x7f]  ;;  %v374_v24 = vmax.f32 %v360_v14, %v508_v0  ;;  %v326_v27 = vld [vmem:[%s585_s26 + $0x29] sm:$0x7f]  ;;  %v498_v44 = vld [vmem:[%s575_s20 + $0x38] sm:$0x7f] }
  0x20   : > { %380 = vst.msk [vmem:[%s630_s7] sm:$0x7f] %vm379_vm0, %v372_v56  ;;  %v332_v26 = vmax.f32 %v318_v16, %v325_v10  ;;  %v292_v28 = vmax.f32 %v278_v18, %v285_v19  ;;  %v503_v30 = vld [vmem:[%s580_s23 + $0x28] sm:$0x7f]  ;;  %v313_v32 = vld [vmem:[%s593_s29 + $0x30] sm:$0x7f] }
  0x21   : > { %381 = vst.msk [vmem:[%s630_s7 + $0x8] sm:$0x7f] %vm379_vm0, %v373_v8  ;;  %v361_v29 = vmax.f32 %v346_v20, %v502_v15  ;;  %v319_v31 = vmax.f32 %v305_v22, %v312_v17  ;;  %v497_v34 = vld [vmem:[%s575_s20 + $0x30] sm:$0x7f]  ;;  %v510_v37 = vld [vmem:[%s575_s20 + $0x29] sm:$0x7f] }
  0x22   : > { %382 = vst.msk [vmem:[%s630_s7 + $0x10] sm:$0x7f] %vm379_vm0, %v374_v24  ;;  %v347_v33 = vmax.f32 %v332_v26, %v496_v21  ;;  %v306_v35 = vmax.f32 %v292_v28, %v299_v23  ;;  %v327_v39 = vld [vmem:[%s585_s26 + $0x31] sm:$0x7f]  ;;  %v505_v49 = vld [vmem:[%s580_s23 + $0x38] sm:$0x7f] }
  0x23   : > { %v375_v36 = vmax.f32 %v361_v29, %v509_v25  ;;  %v333_v38 = vmax.f32 %v319_v31, %v326_v27  ;;  %v504_v41 = vld [vmem:[%s580_s23 + $0x30] sm:$0x7f]  ;;  %v512_v52 = vld [vmem:[%s575_s20 + $0x39] sm:$0x7f] }
  0x24   : > { %v362_v40 = vmax.f32 %v347_v33, %v503_v30  ;;  %v320_v42 = vmax.f32 %v306_v35, %v313_v32  ;;  %v511_v46 = vld [vmem:[%s575_s20 + $0x31] sm:$0x7f] }
  0x25   : > { %383 = vst.msk [vmem:[%s630_s7 + $0x18] sm:$0x7f] %vm379_vm0, %v375_v36  ;;  %v348_v43 = vmax.f32 %v333_v38, %v497_v34 }
  0x26   : > { %v376_v45 = vmax.f32 %v362_v40, %v510_v37  ;;  %v334_v47 = vmax.f32 %v320_v42, %v327_v39 }
  0x27   : > { %v363_v48 = vmax.f32 %v348_v43, %v504_v41 }
  0x28   : > { %384 = vst.msk [vmem:[%s630_s7 + $0x20] sm:$0x7f] %vm379_vm0, %v376_v45  ;;  %v349_v50 = vmax.f32 %v334_v47, %v498_v44 }
  0x29   : > { %v377_v51 = vmax.f32 %v363_v48, %v511_v46 }
  0x2a   : > { %v364_v53 = vmax.f32 %v349_v50, %v505_v49 }
  0x2b   : > { %385 = vst.msk [vmem:[%s630_s7 + $0x28] sm:$0x7f] %vm379_vm0, %v377_v51 }
  0x2c   : > { %v378_v54 = vmax.f32 %v364_v53, %v512_v52 }
  0x2e   : > { %386 = vst.msk [vmem:[%s630_s7 + $0x30] sm:$0x7f] %vm379_vm0, %v378_v54 }
  0x2f PF: > { %s14_s15 = sadd.s32 1, %s534_s15  }
  0x30   : > { %p11_p4 = scmp.ge.s32.totalorder %s14_s15, 4  }
  0x32   :  { %13 = sbr.rel (!%p11_p4) target bundleno = 1 (0x1), region = 77 }

// kernel: reduction_a_forward.6
= control target key start
LH: loop header
LB: loop body
LE: loop exit
PB: predicated region body
PF: predicated region fallthrough
CT: control target
= control target key end

     0   :  { %s1802_s1 = inlined_call_operand.vmem [shape: bf16[128,128], index: 1, kind: input, shape index: {}]   ;;  %s1803_s2 = inlined_call_operand.vmem [shape: f32[1,128], index: 2, kind: input, shape index: {}]   ;;  %s1804_s3 = inlined_call_operand.vmem [shape: f32[1,128], index: 3, kind: input, shape index: {}]   ;;  %s1805_s0 = inlined_call_operand.vmem [shape: bf16[512,128], index: 0, kind: input, shape index: {}]   ;;  %s1806_s4 = inlined_call_operand.vmem [shape: f32[512,128], index: 4, kind: output, shape index: {}]  }
   0x1   :  { %v1300_v0 = vld [vmem:[%s1802_s1 + $0x38] sm:$0xff]  ;;  %v1299_v1 = vld [vmem:[%s1802_s1 + $0x30] sm:$0xff]  ;;  %v1298_v2 = vld [vmem:[%s1802_s1 + $0x28] sm:$0xff] }
   0x2   :  { %469 = vmatpush.bf16.msra.mxu0 %v1300_v0  ;;  %1301 = vmatpush.bf16.msra.mxu1 %v1300_v0  ;;  %v1297_v3 = vld [vmem:[%s1802_s1 + $0x20] sm:$0xff]  ;;  %v1296_v4 = vld [vmem:[%s1802_s1 + $0x18] sm:$0xff]  ;;  %v1295_v5 = vld [vmem:[%s1802_s1 + $0x10] sm:$0xff] }
   0x3   :  { %1302 = vmatpush.bf16.msra.mxu2 %v1300_v0  ;;  %1303 = vmatpush.bf16.msra.mxu3 %v1300_v0  ;;  %v1294_v6 = vld [vmem:[%s1802_s1 + $0x8] sm:$0xff]  ;;  %v1293_v7 = vld [vmem:[%s1802_s1] sm:$0xff]  ;;  %v1263_v16 = vld [vmem:[%s1805_s0 + $0x10] sm:$0xff] }
   0x4   :  { %v1261_v8 = vld [vmem:[%s1805_s0] sm:$0xff]  ;;  %v1262_v12 = vld [vmem:[%s1805_s0 + $0x8] sm:$0xff]  ;;  %v1271_v17 = vld [vmem:[%s1805_s0 + $0x50] sm:$0xff] }
   0x5   :  { %v1269_v9 = vld [vmem:[%s1805_s0 + $0x40] sm:$0xff]  ;;  %v1270_v13 = vld [vmem:[%s1805_s0 + $0x48] sm:$0xff]  ;;  %v1279_v18 = vld [vmem:[%s1805_s0 + $0x90] sm:$0xff] }
   0x6   :  { %470 = vmatpush.bf16.msra.mxu0 %v1299_v1  ;;  %1304 = vmatpush.bf16.msra.mxu1 %v1299_v1  ;;  %v1277_v10 = vld [vmem:[%s1805_s0 + $0x80] sm:$0xff]  ;;  %v1278_v14 = vld [vmem:[%s1805_s0 + $0x88] sm:$0xff]  ;;  %v1287_v19 = vld [vmem:[%s1805_s0 + $0xd0] sm:$0xff] }
   0x7   :  { %1305 = vmatpush.bf16.msra.mxu2 %v1299_v1  ;;  %1306 = vmatpush.bf16.msra.mxu3 %v1299_v1  ;;  %v1285_v11 = vld [vmem:[%s1805_s0 + $0xc0] sm:$0xff]  ;;  %v1286_v15 = vld [vmem:[%s1805_s0 + $0xc8] sm:$0xff]  ;;  %v1264_v20 = vld [vmem:[%s1805_s0 + $0x18] sm:$0xff] }
   0x8   :  { %v1272_v21 = vld [vmem:[%s1805_s0 + $0x58] sm:$0xff]  ;;  %v1265_v24 = vld [vmem:[%s1805_s0 + $0x20] sm:$0xff]  ;;  %v1266_v28 = vld [vmem:[%s1805_s0 + $0x28] sm:$0xff] }
   0x9   :  { %v1280_v22 = vld [vmem:[%s1805_s0 + $0x98] sm:$0xff]  ;;  %v1273_v25 = vld [vmem:[%s1805_s0 + $0x60] sm:$0xff]  ;;  %v1274_v29 = vld [vmem:[%s1805_s0 + $0x68] sm:$0xff] }
   0xa   :  { %471 = vmatpush.bf16.msra.mxu0 %v1298_v2  ;;  %1307 = vmatpush.bf16.msra.mxu1 %v1298_v2  ;;  %v1288_v23 = vld [vmem:[%s1805_s0 + $0xd8] sm:$0xff]  ;;  %v1281_v26 = vld [vmem:[%s1805_s0 + $0xa0] sm:$0xff]  ;;  %v1282_v30 = vld [vmem:[%s1805_s0 + $0xa8] sm:$0xff] }
   0xb   :  { %1308 = vmatpush.bf16.msra.mxu2 %v1298_v2  ;;  %1309 = vmatpush.bf16.msra.mxu3 %v1298_v2  ;;  %v1289_v27 = vld [vmem:[%s1805_s0 + $0xe0] sm:$0xff]  ;;  %v1290_v31 = vld [vmem:[%s1805_s0 + $0xe8] sm:$0xff]  ;;  %v1267_v32 = vld [vmem:[%s1805_s0 + $0x30] sm:$0xff] }
   0xc   :  { %v1275_v33 = vld [vmem:[%s1805_s0 + $0x70] sm:$0xff]  ;;  %v1268_v36 = vld [vmem:[%s1805_s0 + $0x38] sm:$0xff]  ;;  %v1475_v40 = vld [vmem:[%s1803_s2] ss:$0 sm:$0xff] }
   0xd   :  { %v1283_v34 = vld [vmem:[%s1805_s0 + $0xb0] sm:$0xff]  ;;  %v1276_v37 = vld [vmem:[%s1805_s0 + $0x78] sm:$0xff]  ;;  %v1480_v41 = vld [vmem:[%s1804_s3] ss:$0 sm:$0xff] }
   0xe   :  { %472 = vmatpush.bf16.msra.mxu0 %v1297_v3  ;;  %1310 = vmatpush.bf16.msra.mxu1 %v1297_v3  ;;  %v1291_v35 = vld [vmem:[%s1805_s0 + $0xf0] sm:$0xff]  ;;  %v1284_v38 = vld [vmem:[%s1805_s0 + $0xb8] sm:$0xff] }
   0xf   :  { %1311 = vmatpush.bf16.msra.mxu2 %v1297_v3  ;;  %1312 = vmatpush.bf16.msra.mxu3 %v1297_v3  ;;  %v1292_v39 = vld [vmem:[%s1805_s0 + $0xf8] sm:$0xff] }
  0x12   :  { %473 = vmatpush.bf16.msra.mxu0 %v1296_v4  ;;  %1313 = vmatpush.bf16.msra.mxu1 %v1296_v4 }
  0x13   :  { %1314 = vmatpush.bf16.msra.mxu2 %v1296_v4  ;;  %1315 = vmatpush.bf16.msra.mxu3 %v1296_v4 }
  0x16   :  { %474 = vmatpush.bf16.msra.mxu0 %v1295_v5  ;;  %1316 = vmatpush.bf16.msra.mxu1 %v1295_v5 }
  0x17   :  { %1317 = vmatpush.bf16.msra.mxu2 %v1295_v5  ;;  %1318 = vmatpush.bf16.msra.mxu3 %v1295_v5 }
  0x1a   :  { %475 = vmatpush.bf16.msra.mxu0 %v1294_v6  ;;  %1319 = vmatpush.bf16.msra.mxu1 %v1294_v6 }
  0x1b   :  { %1320 = vmatpush.bf16.msra.mxu2 %v1294_v6  ;;  %1321 = vmatpush.bf16.msra.mxu3 %v1294_v6 }
  0x1e   :  { %476 = vmatpush.bf16.msra.mxu0 %v1293_v7  ;;  %1322 = vmatpush.bf16.msra.mxu1 %v1293_v7 }
  0x1f   :  { %1323 = vmatpush.bf16.msra.mxu2 %v1293_v7  ;;  %1324 = vmatpush.bf16.msra.mxu3 %v1293_v7 }
  0x21   :  { %477 = vmatmul.bf16.vlgmr.msra.gmra.mxu0 %v1261_v8  ;;  %517 = vmatmul.bf16.vlgmr.msra.gmra.mxu1 %v1269_v9 }
  0x22   :  { %557 = vmatmul.bf16.vlgmr.msra.gmra.mxu2 %v1277_v10  ;;  %597 = vmatmul.bf16.vlgmr.msra.gmra.mxu3 %v1285_v11 }
  0x31   :  { %482 = vmatmul.bf16.gmra.mxu0 %v1262_v12  ;;  %522 = vmatmul.bf16.gmra.mxu1 %v1270_v13 }
  0x32   :  { %562 = vmatmul.bf16.gmra.mxu2 %v1278_v14  ;;  %602 = vmatmul.bf16.gmra.mxu3 %v1286_v15 }
  0x41   :  { %487 = vmatmul.bf16.gmra.mxu0 %v1263_v16  ;;  %527 = vmatmul.bf16.gmra.mxu1 %v1271_v17 }
  0x42   :  { %567 = vmatmul.bf16.gmra.mxu2 %v1279_v18  ;;  %607 = vmatmul.bf16.gmra.mxu3 %v1287_v19 }
  0x51   :  { %492 = vmatmul.bf16.gmra.mxu0 %v1264_v20  ;;  %532 = vmatmul.bf16.gmra.mxu1 %v1272_v21 }
  0x52   :  { %572 = vmatmul.bf16.gmra.mxu2 %v1280_v22  ;;  %612 = vmatmul.bf16.gmra.mxu3 %v1288_v23 }
  0x61   :  { %497 = vmatmul.bf16.gmra.mxu0 %v1265_v24  ;;  %537 = vmatmul.bf16.gmra.mxu1 %v1273_v25 }
  0x62   :  { %577 = vmatmul.bf16.gmra.mxu2 %v1281_v26  ;;  %617 = vmatmul.bf16.gmra.mxu3 %v1289_v27 }
  0x71   :  { %502 = vmatmul.bf16.gmra.mxu0 %v1266_v28  ;;  %542 = vmatmul.bf16.gmra.mxu1 %v1274_v29 }
  0x72   :  { %582 = vmatmul.bf16.gmra.mxu2 %v1282_v30  ;;  %622 = vmatmul.bf16.gmra.mxu3 %v1290_v31 }
  0x81   :  { %507 = vmatmul.bf16.gmra.mxu0 %v1267_v32  ;;  %547 = vmatmul.bf16.gmra.mxu1 %v1275_v33 }
  0x82   :  { %587 = vmatmul.bf16.gmra.mxu2 %v1283_v34  ;;  %627 = vmatmul.bf16.gmra.mxu3 %v1291_v35 }
  0x91   :  { %512 = vmatmul.bf16.gmra.mxu0 %v1268_v36  ;;  %552 = vmatmul.bf16.gmra.mxu1 %v1276_v37 }
  0x92   :  { %592 = vmatmul.bf16.gmra.mxu2 %v1284_v38  ;;  %632 = vmatmul.bf16.gmra.mxu3 %v1292_v39 }
  0x9e   :  { %v478_v42 = vpop.f32.mrf.mxu0  ;;  %v518_v43 = vpop.f32.mrf.mxu1 }
  0x9f   :  { %v837_v44 = vmul.f32 %v1475_v40, %v478_v42  ;;  %v853_v45 = vmul.f32 %v1475_v40, %v518_v43 }
  0xa1   :  { %v905_v46 = vadd.f32 %v1480_v41, %v837_v44  ;;  %v921_v47 = vadd.f32 %v1480_v41, %v853_v45 }
  0xa3   :  { %v969_v48 = vmax.f32 %v905_v46, 0.0  ;;  %v985_v49 = vmax.f32 %v921_v47, 0.0 }
  0xa5   :  { %1033 = vst [vmem:[%s1806_s4] sm:$0xff] %v969_v48  ;;  %v558_v50 = vpop.f32.mrf.mxu2  ;;  %v598_v51 = vpop.f32.mrf.mxu3 }
  0xa6   :  { %1049 = vst [vmem:[%s1806_s4 + $0x80] sm:$0xff] %v985_v49  ;;  %v869_v52 = vmul.f32 %v1475_v40, %v558_v50  ;;  %v885_v53 = vmul.f32 %v1475_v40, %v598_v51  ;;  %v480_v54 = vpop.f32.mrf.mxu0  ;;  %v520_v55 = vpop.f32.mrf.mxu1 }
  0xa7   :  { %v838_v56 = vmul.f32 %v1475_v40, %v480_v54  ;;  %v854_v57 = vmul.f32 %v1475_v40, %v520_v55 }
  0xa8   :  { %v937_v58 = vadd.f32 %v1480_v41, %v869_v52  ;;  %v953_v59 = vadd.f32 %v1480_v41, %v885_v53 }
  0xa9   :  { %v906_v60 = vadd.f32 %v1480_v41, %v838_v56  ;;  %v922_v61 = vadd.f32 %v1480_v41, %v854_v57 }
  0xaa   :  { %v1001_v62 = vmax.f32 %v937_v58, 0.0  ;;  %v1017_v63 = vmax.f32 %v953_v59, 0.0 }
  0xab   :  { %v970_v0 = vmax.f32 %v906_v60, 0.0  ;;  %v986_v1 = vmax.f32 %v922_v61, 0.0 }
  0xac   :  { %1065 = vst [vmem:[%s1806_s4 + $0x100] sm:$0xff] %v1001_v62 }
  0xad   :  { %1081 = vst [vmem:[%s1806_s4 + $0x180] sm:$0xff] %v1017_v63  ;;  %v560_v2 = vpop.f32.mrf.mxu2  ;;  %v600_v3 = vpop.f32.mrf.mxu3 }
  0xae   :  { %1034 = vst [vmem:[%s1806_s4 + $0x8] sm:$0xff] %v970_v0  ;;  %v870_v4 = vmul.f32 %v1475_v40, %v560_v2  ;;  %v886_v5 = vmul.f32 %v1475_v40, %v600_v3  ;;  %v483_v6 = vpop.f32.mrf.mxu0  ;;  %v523_v7 = vpop.f32.mrf.mxu1 }
  0xaf   :  { %1050 = vst [vmem:[%s1806_s4 + $0x88] sm:$0xff] %v986_v1  ;;  %v839_v8 = vmul.f32 %v1475_v40, %v483_v6  ;;  %v855_v9 = vmul.f32 %v1475_v40, %v523_v7 }
  0xb0   :  { %v938_v10 = vadd.f32 %v1480_v41, %v870_v4  ;;  %v954_v11 = vadd.f32 %v1480_v41, %v886_v5 }
  0xb1   :  { %v907_v12 = vadd.f32 %v1480_v41, %v839_v8  ;;  %v923_v13 = vadd.f32 %v1480_v41, %v855_v9 }
  0xb2   :  { %v1002_v14 = vmax.f32 %v938_v10, 0.0  ;;  %v1018_v15 = vmax.f32 %v954_v11, 0.0 }
  0xb3   :  { %v971_v16 = vmax.f32 %v907_v12, 0.0  ;;  %v987_v17 = vmax.f32 %v923_v13, 0.0 }
  0xb4   :  { %1066 = vst [vmem:[%s1806_s4 + $0x108] sm:$0xff] %v1002_v14 }
  0xb5   :  { %1082 = vst [vmem:[%s1806_s4 + $0x188] sm:$0xff] %v1018_v15  ;;  %v563_v18 = vpop.f32.mrf.mxu2  ;;  %v603_v19 = vpop.f32.mrf.mxu3 }
  0xb6   :  { %1035 = vst [vmem:[%s1806_s4 + $0x10] sm:$0xff] %v971_v16  ;;  %v871_v20 = vmul.f32 %v1475_v40, %v563_v18  ;;  %v887_v21 = vmul.f32 %v1475_v40, %v603_v19  ;;  %v485_v22 = vpop.f32.mrf.mxu0  ;;  %v525_v23 = vpop.f32.mrf.mxu1 }
  0xb7   :  { %1051 = vst [vmem:[%s1806_s4 + $0x90] sm:$0xff] %v987_v17  ;;  %v840_v24 = vmul.f32 %v1475_v40, %v485_v22  ;;  %v856_v25 = vmul.f32 %v1475_v40, %v525_v23 }
  0xb8   :  { %v939_v26 = vadd.f32 %v1480_v41, %v871_v20  ;;  %v955_v27 = vadd.f32 %v1480_v41, %v887_v21 }
  0xb9   :  { %v908_v28 = vadd.f32 %v1480_v41, %v840_v24  ;;  %v924_v29 = vadd.f32 %v1480_v41, %v856_v25 }
  0xba   :  { %v1003_v30 = vmax.f32 %v939_v26, 0.0  ;;  %v1019_v31 = vmax.f32 %v955_v27, 0.0 }
  0xbb   :  { %v972_v32 = vmax.f32 %v908_v28, 0.0  ;;  %v988_v33 = vmax.f32 %v924_v29, 0.0 }
  0xbc   :  { %1067 = vst [vmem:[%s1806_s4 + $0x110] sm:$0xff] %v1003_v30 }
  0xbd   :  { %1083 = vst [vmem:[%s1806_s4 + $0x190] sm:$0xff] %v1019_v31  ;;  %v565_v34 = vpop.f32.mrf.mxu2  ;;  %v605_v35 = vpop.f32.mrf.mxu3 }
  0xbe   :  { %1036 = vst [vmem:[%s1806_s4 + $0x18] sm:$0xff] %v972_v32  ;;  %v872_v36 = vmul.f32 %v1475_v40, %v565_v34  ;;  %v888_v37 = vmul.f32 %v1475_v40, %v605_v35  ;;  %v488_v38 = vpop.f32.mrf.mxu0  ;;  %v528_v39 = vpop.f32.mrf.mxu1 }
  0xbf   :  { %1052 = vst [vmem:[%s1806_s4 + $0x98] sm:$0xff] %v988_v33  ;;  %v841_v42 = vmul.f32 %v1475_v40, %v488_v38  ;;  %v857_v43 = vmul.f32 %v1475_v40, %v528_v39 }
  0xc0   :  { %v940_v44 = vadd.f32 %v1480_v41, %v872_v36  ;;  %v956_v45 = vadd.f32 %v1480_v41, %v888_v37 }
  0xc1   :  { %v909_v46 = vadd.f32 %v1480_v41, %v841_v42  ;;  %v925_v47 = vadd.f32 %v1480_v41, %v857_v43 }
  0xc2   :  { %v1004_v48 = vmax.f32 %v940_v44, 0.0  ;;  %v1020_v49 = vmax.f32 %v956_v45, 0.0 }
  0xc3   :  { %v973_v50 = vmax.f32 %v909_v46, 0.0  ;;  %v989_v51 = vmax.f32 %v925_v47, 0.0 }
  0xc4   :  { %1068 = vst [vmem:[%s1806_s4 + $0x118] sm:$0xff] %v1004_v48 }
  0xc5   :  { %1084 = vst [vmem:[%s1806_s4 + $0x198] sm:$0xff] %v1020_v49  ;;  %v568_v52 = vpop.f32.mrf.mxu2  ;;  %v608_v53 = vpop.f32.mrf.mxu3 }
  0xc6   :  { %1037 = vst [vmem:[%s1806_s4 + $0x20] sm:$0xff] %v973_v50  ;;  %v873_v54 = vmul.f32 %v1475_v40, %v568_v52  ;;  %v889_v55 = vmul.f32 %v1475_v40, %v608_v53  ;;  %v490_v56 = vpop.f32.mrf.mxu0  ;;  %v530_v57 = vpop.f32.mrf.mxu1 }
  0xc7   :  { %1053 = vst [vmem:[%s1806_s4 + $0xa0] sm:$0xff] %v989_v51  ;;  %v842_v58 = vmul.f32 %v1475_v40, %v490_v56  ;;  %v858_v59 = vmul.f32 %v1475_v40, %v530_v57 }
  0xc8   :  { %v941_v60 = vadd.f32 %v1480_v41, %v873_v54  ;;  %v957_v61 = vadd.f32 %v1480_v41, %v889_v55 }
  0xc9   :  { %v910_v62 = vadd.f32 %v1480_v41, %v842_v58  ;;  %v926_v63 = vadd.f32 %v1480_v41, %v858_v59 }
  0xca   :  { %v1005_v0 = vmax.f32 %v941_v60, 0.0  ;;  %v1021_v1 = vmax.f32 %v957_v61, 0.0 }
  0xcb   :  { %v974_v2 = vmax.f32 %v910_v62, 0.0  ;;  %v990_v3 = vmax.f32 %v926_v63, 0.0 }
  0xcc   :  { %1069 = vst [vmem:[%s1806_s4 + $0x120] sm:$0xff] %v1005_v0 }
  0xcd   :  { %1085 = vst [vmem:[%s1806_s4 + $0x1a0] sm:$0xff] %v1021_v1  ;;  %v570_v4 = vpop.f32.mrf.mxu2  ;;  %v610_v5 = vpop.f32.mrf.mxu3 }
  0xce   :  { %1038 = vst [vmem:[%s1806_s4 + $0x28] sm:$0xff] %v974_v2  ;;  %v874_v6 = vmul.f32 %v1475_v40, %v570_v4  ;;  %v890_v7 = vmul.f32 %v1475_v40, %v610_v5  ;;  %v493_v8 = vpop.f32.mrf.mxu0  ;;  %v533_v9 = vpop.f32.mrf.mxu1 }
  0xcf   :  { %1054 = vst [vmem:[%s1806_s4 + $0xa8] sm:$0xff] %v990_v3  ;;  %v843_v10 = vmul.f32 %v1475_v40, %v493_v8  ;;  %v859_v11 = vmul.f32 %v1475_v40, %v533_v9 }
  0xd0   :  { %v942_v12 = vadd.f32 %v1480_v41, %v874_v6  ;;  %v958_v13 = vadd.f32 %v1480_v41, %v890_v7 }
  0xd1   :  { %v911_v14 = vadd.f32 %v1480_v41, %v843_v10  ;;  %v927_v15 = vadd.f32 %v1480_v41, %v859_v11 }
  0xd2   :  { %v1006_v16 = vmax.f32 %v942_v12, 0.0  ;;  %v1022_v17 = vmax.f32 %v958_v13, 0.0 }
  0xd3   :  { %v975_v18 = vmax.f32 %v911_v14, 0.0  ;;  %v991_v19 = vmax.f32 %v927_v15, 0.0 }
  0xd4   :  { %1070 = vst [vmem:[%s1806_s4 + $0x128] sm:$0xff] %v1006_v16 }
  0xd5   :  { %1086 = vst [vmem:[%s1806_s4 + $0x1a8] sm:$0xff] %v1022_v17  ;;  %v573_v20 = vpop.f32.mrf.mxu2  ;;  %v613_v21 = vpop.f32.mrf.mxu3 }
  0xd6   :  { %1039 = vst [vmem:[%s1806_s4 + $0x30] sm:$0xff] %v975_v18  ;;  %v875_v22 = vmul.f32 %v1475_v40, %v573_v20  ;;  %v891_v23 = vmul.f32 %v1475_v40, %v613_v21  ;;  %v495_v24 = vpop.f32.mrf.mxu0  ;;  %v535_v25 = vpop.f32.mrf.mxu1 }
  0xd7   :  { %1055 = vst [vmem:[%s1806_s4 + $0xb0] sm:$0xff] %v991_v19  ;;  %v844_v26 = vmul.f32 %v1475_v40, %v495_v24  ;;  %v860_v27 = vmul.f32 %v1475_v40, %v535_v25 }
  0xd8   :  { %v943_v28 = vadd.f32 %v1480_v41, %v875_v22  ;;  %v959_v29 = vadd.f32 %v1480_v41, %v891_v23 }
  0xd9   :  { %v912_v30 = vadd.f32 %v1480_v41, %v844_v26  ;;  %v928_v31 = vadd.f32 %v1480_v41, %v860_v27 }
  0xda   :  { %v1007_v32 = vmax.f32 %v943_v28, 0.0  ;;  %v1023_v33 = vmax.f32 %v959_v29, 0.0 }
  0xdb   :  { %v976_v34 = vmax.f32 %v912_v30, 0.0  ;;  %v992_v35 = vmax.f32 %v928_v31, 0.0 }
  0xdc   :  { %1071 = vst [vmem:[%s1806_s4 + $0x130] sm:$0xff] %v1007_v32 }
  0xdd   :  { %1087 = vst [vmem:[%s1806_s4 + $0x1b0] sm:$0xff] %v1023_v33  ;;  %v575_v36 = vpop.f32.mrf.mxu2  ;;  %v615_v37 = vpop.f32.mrf.mxu3 }
  0xde   :  { %1040 = vst [vmem:[%s1806_s4 + $0x38] sm:$0xff] %v976_v34  ;;  %v876_v38 = vmul.f32 %v1475_v40, %v575_v36  ;;  %v892_v39 = vmul.f32 %v1475_v40, %v615_v37  ;;  %v498_v42 = vpop.f32.mrf.mxu0  ;;  %v538_v43 = vpop.f32.mrf.mxu1 }
  0xdf   :  { %1056 = vst [vmem:[%s1806_s4 + $0xb8] sm:$0xff] %v992_v35  ;;  %v845_v44 = vmul.f32 %v1475_v40, %v498_v42  ;;  %v861_v45 = vmul.f32 %v1475_v40, %v538_v43 }
  0xe0   :  { %v944_v46 = vadd.f32 %v1480_v41, %v876_v38  ;;  %v960_v47 = vadd.f32 %v1480_v41, %v892_v39 }
  0xe1   :  { %v913_v48 = vadd.f32 %v1480_v41, %v845_v44  ;;  %v929_v49 = vadd.f32 %v1480_v41, %v861_v45 }
  0xe2   :  { %v1008_v50 = vmax.f32 %v944_v46, 0.0  ;;  %v1024_v51 = vmax.f32 %v960_v47, 0.0 }
  0xe3   :  { %v977_v52 = vmax.f32 %v913_v48, 0.0  ;;  %v993_v53 = vmax.f32 %v929_v49, 0.0 }
  0xe4   :  { %1072 = vst [vmem:[%s1806_s4 + $0x138] sm:$0xff] %v1008_v50 }
  0xe5   :  { %1088 = vst [vmem:[%s1806_s4 + $0x1b8] sm:$0xff] %v1024_v51  ;;  %v578_v54 = vpop.f32.mrf.mxu2  ;;  %v618_v55 = vpop.f32.mrf.mxu3 }
  0xe6   :  { %1041 = vst [vmem:[%s1806_s4 + $0x40] sm:$0xff] %v977_v52  ;;  %v877_v56 = vmul.f32 %v1475_v40, %v578_v54  ;;  %v893_v57 = vmul.f32 %v1475_v40, %v618_v55  ;;  %v500_v58 = vpop.f32.mrf.mxu0  ;;  %v540_v59 = vpop.f32.mrf.mxu1 }
  0xe7   :  { %1057 = vst [vmem:[%s1806_s4 + $0xc0] sm:$0xff] %v993_v53  ;;  %v846_v60 = vmul.f32 %v1475_v40, %v500_v58  ;;  %v862_v61 = vmul.f32 %v1475_v40, %v540_v59 }
  0xe8   :  { %v945_v62 = vadd.f32 %v1480_v41, %v877_v56  ;;  %v961_v63 = vadd.f32 %v1480_v41, %v893_v57 }
  0xe9   :  { %v914_v0 = vadd.f32 %v1480_v41, %v846_v60  ;;  %v930_v1 = vadd.f32 %v1480_v41, %v862_v61 }
  0xea   :  { %v1009_v2 = vmax.f32 %v945_v62, 0.0  ;;  %v1025_v3 = vmax.f32 %v961_v63, 0.0 }
  0xeb   :  { %v978_v4 = vmax.f32 %v914_v0, 0.0  ;;  %v994_v5 = vmax.f32 %v930_v1, 0.0 }
  0xec   :  { %1073 = vst [vmem:[%s1806_s4 + $0x140] sm:$0xff] %v1009_v2 }
  0xed   :  { %1089 = vst [vmem:[%s1806_s4 + $0x1c0] sm:$0xff] %v1025_v3  ;;  %v580_v6 = vpop.f32.mrf.mxu2  ;;  %v620_v7 = vpop.f32.mrf.mxu3 }
  0xee   :  { %1042 = vst [vmem:[%s1806_s4 + $0x48] sm:$0xff] %v978_v4  ;;  %v878_v8 = vmul.f32 %v1475_v40, %v580_v6  ;;  %v894_v9 = vmul.f32 %v1475_v40, %v620_v7  ;;  %v503_v10 = vpop.f32.mrf.mxu0  ;;  %v543_v11 = vpop.f32.mrf.mxu1 }
  0xef   :  { %1058 = vst [vmem:[%s1806_s4 + $0xc8] sm:$0xff] %v994_v5  ;;  %v847_v12 = vmul.f32 %v1475_v40, %v503_v10  ;;  %v863_v13 = vmul.f32 %v1475_v40, %v543_v11 }
  0xf0   :  { %v946_v14 = vadd.f32 %v1480_v41, %v878_v8  ;;  %v962_v15 = vadd.f32 %v1480_v41, %v894_v9 }
  0xf1   :  { %v915_v16 = vadd.f32 %v1480_v41, %v847_v12  ;;  %v931_v17 = vadd.f32 %v1480_v41, %v863_v13 }
  0xf2   :  { %v1010_v18 = vmax.f32 %v946_v14, 0.0  ;;  %v1026_v19 = vmax.f32 %v962_v15, 0.0 }
  0xf3   :  { %v979_v20 = vmax.f32 %v915_v16, 0.0  ;;  %v995_v21 = vmax.f32 %v931_v17, 0.0 }
  0xf4   :  { %1074 = vst [vmem:[%s1806_s4 + $0x148] sm:$0xff] %v1010_v18 }
  0xf5   :  { %1090 = vst [vmem:[%s1806_s4 + $0x1c8] sm:$0xff] %v1026_v19  ;;  %v583_v22 = vpop.f32.mrf.mxu2  ;;  %v623_v23 = vpop.f32.mrf.mxu3 }
  0xf6   :  { %1043 = vst [vmem:[%s1806_s4 + $0x50] sm:$0xff] %v979_v20  ;;  %v879_v24 = vmul.f32 %v1475_v40, %v583_v22  ;;  %v895_v25 = vmul.f32 %v1475_v40, %v623_v23  ;;  %v505_v26 = vpop.f32.mrf.mxu0  ;;  %v545_v27 = vpop.f32.mrf.mxu1 }
  0xf7   :  { %1059 = vst [vmem:[%s1806_s4 + $0xd0] sm:$0xff] %v995_v21  ;;  %v848_v28 = vmul.f32 %v1475_v40, %v505_v26  ;;  %v864_v29 = vmul.f32 %v1475_v40, %v545_v27 }
  0xf8   :  { %v947_v30 = vadd.f32 %v1480_v41, %v879_v24  ;;  %v963_v31 = vadd.f32 %v1480_v41, %v895_v25 }
  0xf9   :  { %v916_v32 = vadd.f32 %v1480_v41, %v848_v28  ;;  %v932_v33 = vadd.f32 %v1480_v41, %v864_v29 }
  0xfa   :  { %v1011_v34 = vmax.f32 %v947_v30, 0.0  ;;  %v1027_v35 = vmax.f32 %v963_v31, 0.0 }
  0xfb   :  { %v980_v36 = vmax.f32 %v916_v32, 0.0  ;;  %v996_v37 = vmax.f32 %v932_v33, 0.0 }
  0xfc   :  { %1075 = vst [vmem:[%s1806_s4 + $0x150] sm:$0xff] %v1011_v34 }
  0xfd   :  { %1091 = vst [vmem:[%s1806_s4 + $0x1d0] sm:$0xff] %v1027_v35  ;;  %v585_v38 = vpop.f32.mrf.mxu2  ;;  %v625_v39 = vpop.f32.mrf.mxu3 }
  0xfe   :  { %1044 = vst [vmem:[%s1806_s4 + $0x58] sm:$0xff] %v980_v36  ;;  %v880_v42 = vmul.f32 %v1475_v40, %v585_v38  ;;  %v896_v43 = vmul.f32 %v1475_v40, %v625_v39  ;;  %v508_v44 = vpop.f32.mrf.mxu0  ;;  %v548_v45 = vpop.f32.mrf.mxu1 }
  0xff   :  { %1060 = vst [vmem:[%s1806_s4 + $0xd8] sm:$0xff] %v996_v37  ;;  %v849_v46 = vmul.f32 %v1475_v40, %v508_v44  ;;  %v865_v47 = vmul.f32 %v1475_v40, %v548_v45 }
 0x100   :  { %v948_v48 = vadd.f32 %v1480_v41, %v880_v42  ;;  %v964_v49 = vadd.f32 %v1480_v41, %v896_v43 }
 0x101   :  { %v917_v50 = vadd.f32 %v1480_v41, %v849_v46  ;;  %v933_v51 = vadd.f32 %v1480_v41, %v865_v47 }
 0x102   :  { %v1012_v52 = vmax.f32 %v948_v48, 0.0  ;;  %v1028_v53 = vmax.f32 %v964_v49, 0.0 }
 0x103   :  { %v981_v54 = vmax.f32 %v917_v50, 0.0  ;;  %v997_v55 = vmax.f32 %v933_v51, 0.0 }
 0x104   :  { %1076 = vst [vmem:[%s1806_s4 + $0x158] sm:$0xff] %v1012_v52 }
 0x105   :  { %1092 = vst [vmem:[%s1806_s4 + $0x1d8] sm:$0xff] %v1028_v53  ;;  %v588_v56 = vpop.f32.mrf.mxu2  ;;  %v628_v57 = vpop.f32.mrf.mxu3 }
 0x106   :  { %1045 = vst [vmem:[%s1806_s4 + $0x60] sm:$0xff] %v981_v54  ;;  %v881_v58 = vmul.f32 %v1475_v40, %v588_v56  ;;  %v897_v59 = vmul.f32 %v1475_v40, %v628_v57  ;;  %v510_v60 = vpop.f32.mrf.mxu0  ;;  %v550_v61 = vpop.f32.mrf.mxu1 }
 0x107   :  { %1061 = vst [vmem:[%s1806_s4 + $0xe0] sm:$0xff] %v997_v55  ;;  %v850_v62 = vmul.f32 %v1475_v40, %v510_v60  ;;  %v866_v63 = vmul.f32 %v1475_v40, %v550_v61 }
 0x108   :  { %v949_v0 = vadd.f32 %v1480_v41, %v881_v58  ;;  %v965_v1 = vadd.f32 %v1480_v41, %v897_v59 }
 0x109   :  { %v918_v2 = vadd.f32 %v1480_v41, %v850_v62  ;;  %v934_v3 = vadd.f32 %v1480_v41, %v866_v63 }
 0x10a   :  { %v1013_v4 = vmax.f32 %v949_v0, 0.0  ;;  %v1029_v5 = vmax.f32 %v965_v1, 0.0 }
 0x10b   :  { %v982_v6 = vmax.f32 %v918_v2, 0.0  ;;  %v998_v7 = vmax.f32 %v934_v3, 0.0 }
 0x10c   :  { %1077 = vst [vmem:[%s1806_s4 + $0x160] sm:$0xff] %v1013_v4 }
 0x10d   :  { %1093 = vst [vmem:[%s1806_s4 + $0x1e0] sm:$0xff] %v1029_v5  ;;  %v590_v8 = vpop.f32.mrf.mxu2  ;;  %v630_v9 = vpop.f32.mrf.mxu3 }
 0x10e   :  { %1046 = vst [vmem:[%s1806_s4 + $0x68] sm:$0xff] %v982_v6  ;;  %v882_v10 = vmul.f32 %v1475_v40, %v590_v8  ;;  %v898_v11 = vmul.f32 %v1475_v40, %v630_v9  ;;  %v513_v12 = vpop.f32.mrf.mxu0  ;;  %v553_v13 = vpop.f32.mrf.mxu1 }
 0x10f   :  { %1062 = vst [vmem:[%s1806_s4 + $0xe8] sm:$0xff] %v998_v7  ;;  %v851_v14 = vmul.f32 %v1475_v40, %v513_v12  ;;  %v867_v15 = vmul.f32 %v1475_v40, %v553_v13 }
 0x110   :  { %v950_v16 = vadd.f32 %v1480_v41, %v882_v10  ;;  %v966_v17 = vadd.f32 %v1480_v41, %v898_v11 }
 0x111   :  { %v919_v18 = vadd.f32 %v1480_v41, %v851_v14  ;;  %v935_v19 = vadd.f32 %v1480_v41, %v867_v15 }
 0x112   :  { %v1014_v20 = vmax.f32 %v950_v16, 0.0  ;;  %v1030_v21 = vmax.f32 %v966_v17, 0.0 }
 0x113   :  { %v983_v22 = vmax.f32 %v919_v18, 0.0  ;;  %v999_v23 = vmax.f32 %v935_v19, 0.0 }
 0x114   :  { %1078 = vst [vmem:[%s1806_s4 + $0x168] sm:$0xff] %v1014_v20 }
 0x115   :  { %1094 = vst [vmem:[%s1806_s4 + $0x1e8] sm:$0xff] %v1030_v21  ;;  %v593_v24 = vpop.f32.mrf.mxu2  ;;  %v633_v25 = vpop.f32.mrf.mxu3 }
 0x116   :  { %1047 = vst [vmem:[%s1806_s4 + $0x70] sm:$0xff] %v983_v22  ;;  %v883_v26 = vmul.f32 %v1475_v40, %v593_v24  ;;  %v899_v27 = vmul.f32 %v1475_v40, %v633_v25  ;;  %v515_v28 = vpop.f32.mrf.mxu0  ;;  %v555_v29 = vpop.f32.mrf.mxu1 }
 0x117   :  { %1063 = vst [vmem:[%s1806_s4 + $0xf0] sm:$0xff] %v999_v23  ;;  %v852_v30 = vmul.f32 %v1475_v40, %v515_v28  ;;  %v868_v31 = vmul.f32 %v1475_v40, %v555_v29 }
 0x118   :  { %v951_v32 = vadd.f32 %v1480_v41, %v883_v26  ;;  %v967_v33 = vadd.f32 %v1480_v41, %v899_v27 }
 0x119   :  { %v920_v34 = vadd.f32 %v1480_v41, %v852_v30  ;;  %v936_v35 = vadd.f32 %v1480_v41, %v868_v31 }
 0x11a   :  { %v1015_v36 = vmax.f32 %v951_v32, 0.0  ;;  %v1031_v37 = vmax.f32 %v967_v33, 0.0 }
 0x11b   :  { %v984_v38 = vmax.f32 %v920_v34, 0.0  ;;  %v1000_v39 = vmax.f32 %v936_v35, 0.0 }
 0x11c   :  { %1079 = vst [vmem:[%s1806_s4 + $0x170] sm:$0xff] %v1015_v36 }
 0x11d   :  { %1095 = vst [vmem:[%s1806_s4 + $0x1f0] sm:$0xff] %v1031_v37  ;;  %v595_v42 = vpop.f32.mrf.mxu2  ;;  %v635_v43 = vpop.f32.mrf.mxu3 }
 0x11e   :  { %1048 = vst [vmem:[%s1806_s4 + $0x78] sm:$0xff] %v984_v38  ;;  %v884_v44 = vmul.f32 %v1475_v40, %v595_v42  ;;  %v900_v45 = vmul.f32 %v1475_v40, %v635_v43 }
 0x11f   :  { %1064 = vst [vmem:[%s1806_s4 + $0xf8] sm:$0xff] %v1000_v39 }
 0x120   :  { %v952_v46 = vadd.f32 %v1480_v41, %v884_v44  ;;  %v968_v47 = vadd.f32 %v1480_v41, %v900_v45 }
 0x122   :  { %v1016_v48 = vmax.f32 %v952_v46, 0.0  ;;  %v1032_v49 = vmax.f32 %v968_v47, 0.0 }
 0x124   :  { %1080 = vst [vmem:[%s1806_s4 + $0x178] sm:$0xff] %v1016_v48 }
 0x125   :  { %1096 = vst [vmem:[%s1806_s4 + $0x1f8] sm:$0xff] %v1032_v49 }

// kernel: reduction_a_forward.5
= control target key start
LH: loop header
LB: loop body
LE: loop exit
PB: predicated region body
PF: predicated region fallthrough
CT: control target
= control target key end

     0   :  { %s577_s1 = inlined_call_operand.vmem [shape: bf16[128,128], index: 1, kind: input, shape index: {}]   ;;  %s578_s2 = inlined_call_operand.vmem [shape: f32[1,128], index: 2, kind: input, shape index: {}]   ;;  %s579_s3 = inlined_call_operand.vmem [shape: f32[1,128], index: 3, kind: input, shape index: {}]   ;;  %s580_s0 = inlined_call_operand.vmem [shape: bf16[112,128], index: 0, kind: input, shape index: {}]   ;;  %s581_s4 = inlined_call_operand.vmem [shape: f32[112,128], index: 4, kind: output, shape index: {}]  }
   0x1   :  { %v400_v0 = vld [vmem:[%s577_s1 + $0x38] sm:$0xff]  ;;  %v399_v1 = vld [vmem:[%s577_s1 + $0x30] sm:$0xff]  ;;  %v398_v2 = vld [vmem:[%s577_s1 + $0x28] sm:$0xff] }
   0x2   :  { %401 = vmatpush.bf16.msra.mxu1 %v400_v0  ;;  %402 = vmatpush.bf16.msra.mxu2 %v400_v0  ;;  %v397_v3 = vld [vmem:[%s577_s1 + $0x20] sm:$0xff]  ;;  %v396_v4 = vld [vmem:[%s577_s1 + $0x18] sm:$0xff]  ;;  %v395_v5 = vld [vmem:[%s577_s1 + $0x10] sm:$0xff] }
   0x3   :  { %403 = vmatpush.bf16.msra.mxu3 %v400_v0  ;;  %169 = vmatpush.bf16.msra.mxu0 %v400_v0  ;;  %v394_v6 = vld [vmem:[%s577_s1 + $0x8] sm:$0xff]  ;;  %v393_v7 = vld [vmem:[%s577_s1] sm:$0xff]  ;;  %v389_v9 = vld [vmem:[%s580_s0 + $0x18] sm:$0xff] }
   0x4   :  { %v387_v8 = vld [vmem:[%s580_s0 + $0x8] sm:$0xff]  ;;  %v386_v11 = vld [vmem:[%s580_s0] sm:$0xff]  ;;  %v388_v12 = vld [vmem:[%s580_s0 + $0x10] sm:$0xff] }
   0x5   :  { %v391_v10 = vld [vmem:[%s580_s0 + $0x28] sm:$0xff]  ;;  %v390_v13 = vld [vmem:[%s580_s0 + $0x20] sm:$0xff]  ;;  %v392_v14 = vld [vmem:[%s580_s0 + $0x30] sm:$0xff] }
   0x6   :  { %404 = vmatpush.bf16.msra.mxu1 %v399_v1  ;;  %405 = vmatpush.bf16.msra.mxu2 %v399_v1  ;;  %v500_v15 = vld [vmem:[%s578_s2] ss:$0 sm:$0xff] }
   0x7   :  { %406 = vmatpush.bf16.msra.mxu3 %v399_v1  ;;  %170 = vmatpush.bf16.msra.mxu0 %v399_v1  ;;  %v505_v16 = vld [vmem:[%s579_s3] ss:$0 sm:$0xff] }
   0xa   :  { %407 = vmatpush.bf16.msra.mxu1 %v398_v2  ;;  %408 = vmatpush.bf16.msra.mxu2 %v398_v2 }
   0xb   :  { %409 = vmatpush.bf16.msra.mxu3 %v398_v2  ;;  %171 = vmatpush.bf16.msra.mxu0 %v398_v2 }
   0xe   :  { %410 = vmatpush.bf16.msra.mxu1 %v397_v3  ;;  %411 = vmatpush.bf16.msra.mxu2 %v397_v3 }
   0xf   :  { %412 = vmatpush.bf16.msra.mxu3 %v397_v3  ;;  %172 = vmatpush.bf16.msra.mxu0 %v397_v3 }
  0x12   :  { %413 = vmatpush.bf16.msra.mxu1 %v396_v4  ;;  %414 = vmatpush.bf16.msra.mxu2 %v396_v4 }
  0x13   :  { %415 = vmatpush.bf16.msra.mxu3 %v396_v4  ;;  %173 = vmatpush.bf16.msra.mxu0 %v396_v4 }
  0x16   :  { %416 = vmatpush.bf16.msra.mxu1 %v395_v5  ;;  %417 = vmatpush.bf16.msra.mxu2 %v395_v5 }
  0x17   :  { %418 = vmatpush.bf16.msra.mxu3 %v395_v5  ;;  %174 = vmatpush.bf16.msra.mxu0 %v395_v5 }
  0x1a   :  { %419 = vmatpush.bf16.msra.mxu1 %v394_v6  ;;  %420 = vmatpush.bf16.msra.mxu2 %v394_v6 }
  0x1b   :  { %421 = vmatpush.bf16.msra.mxu3 %v394_v6  ;;  %175 = vmatpush.bf16.msra.mxu0 %v394_v6 }
  0x1e   :  { %422 = vmatpush.bf16.msra.mxu1 %v393_v7  ;;  %423 = vmatpush.bf16.msra.mxu2 %v393_v7 }
  0x1f   :  { %424 = vmatpush.bf16.msra.mxu3 %v393_v7  ;;  %176 = vmatpush.bf16.msra.mxu0 %v393_v7 }
  0x21   :  { %182 = vmatmul.bf16.vlgmr.msra.gmra.mxu1 %v387_v8  ;;  %192 = vmatmul.bf16.vlgmr.msra.gmra.mxu2 %v389_v9 }
  0x22   :  { %202 = vmatmul.bf16.vlgmr.msra.gmra.mxu3 %v391_v10  ;;  %177 = vmatmul.bf16.vlgmr.msra.gmra.mxu0 %v386_v11 }
  0x31   :  { %187 = vmatmul.bf16.gmra.mxu1 %v388_v12  ;;  %197 = vmatmul.bf16.gmra.mxu2 %v390_v13 }
  0x32   :  { %207 = vmatmul.bf16.gmra.mxu3 %v392_v14 }
  0x9e   :  { %v183_v17 = vpop.f32.mrf.mxu1 }
  0x9f   :  { %v264_v18 = vmul.f32 %v500_v15, %v183_v17  ;;  %v178_v19 = vpop.f32.mrf.mxu0 }
  0xa0   :  { %v262_v20 = vmul.f32 %v500_v15, %v178_v19 }
  0xa1   :  { %v282_v21 = vadd.f32 %v505_v16, %v264_v18 }
  0xa2   :  { %v280_v22 = vadd.f32 %v505_v16, %v262_v20 }
  0xa3   :  { %v296_v23 = vmax.f32 %v282_v21, 0.0 }
  0xa4   :  { %v193_v24 = vpop.f32.mrf.mxu2  ;;  %v294_v25 = vmax.f32 %v280_v22, 0.0 }
  0xa5   :  { %310 = vst [vmem:[%s581_s4 + $0x10] sm:$0xff] %v296_v23  ;;  %v268_v26 = vmul.f32 %v500_v15, %v193_v24  ;;  %v203_v27 = vpop.f32.mrf.mxu3 }
  0xa6   :  { %v272_v28 = vmul.f32 %v500_v15, %v203_v27  ;;  %v185_v29 = vpop.f32.mrf.mxu1  ;;  %308 = vst [vmem:[%s581_s4] sm:$0xff] %v294_v25 }
  0xa7   :  { %v286_v30 = vadd.f32 %v505_v16, %v268_v26  ;;  %v265_v31 = vmul.f32 %v500_v15, %v185_v29  ;;  %v180_v32 = vpop.f32.mrf.mxu0 }
  0xa8   :  { %v290_v33 = vadd.f32 %v505_v16, %v272_v28  ;;  %v263_v34 = vmul.f32 %v500_v15, %v180_v32 }
  0xa9   :  { %v300_v35 = vmax.f32 %v286_v30, 0.0  ;;  %v283_v36 = vadd.f32 %v505_v16, %v265_v31 }
  0xaa   :  { %v304_v37 = vmax.f32 %v290_v33, 0.0  ;;  %v281_v38 = vadd.f32 %v505_v16, %v263_v34 }
  0xab   :  { %314 = vst [vmem:[%s581_s4 + $0x30] sm:$0xff] %v300_v35  ;;  %v297_v39 = vmax.f32 %v283_v36, 0.0 }
  0xac   :  { %318 = vst [vmem:[%s581_s4 + $0x50] sm:$0xff] %v304_v37  ;;  %v195_v40 = vpop.f32.mrf.mxu2  ;;  %v295_v41 = vmax.f32 %v281_v38, 0.0 }
  0xad   :  { %311 = vst [vmem:[%s581_s4 + $0x18] sm:$0xff] %v297_v39  ;;  %v269_v42 = vmul.f32 %v500_v15, %v195_v40  ;;  %v205_v43 = vpop.f32.mrf.mxu3 }
  0xae   :  { %v273_v44 = vmul.f32 %v500_v15, %v205_v43  ;;  %v188_v45 = vpop.f32.mrf.mxu1  ;;  %309 = vst [vmem:[%s581_s4 + $0x8] sm:$0xff] %v295_v41 }
  0xaf   :  { %v287_v46 = vadd.f32 %v505_v16, %v269_v42  ;;  %v266_v47 = vmul.f32 %v500_v15, %v188_v45 }
  0xb0   :  { %v291_v48 = vadd.f32 %v505_v16, %v273_v44 }
  0xb1   :  { %v301_v49 = vmax.f32 %v287_v46, 0.0  ;;  %v284_v50 = vadd.f32 %v505_v16, %v266_v47 }
  0xb2   :  { %v305_v51 = vmax.f32 %v291_v48, 0.0 }
  0xb3   :  { %315 = vst [vmem:[%s581_s4 + $0x38] sm:$0xff] %v301_v49  ;;  %v298_v52 = vmax.f32 %v284_v50, 0.0 }
  0xb4   :  { %319 = vst [vmem:[%s581_s4 + $0x58] sm:$0xff] %v305_v51  ;;  %v198_v53 = vpop.f32.mrf.mxu2 }
  0xb5   :  { %312 = vst [vmem:[%s581_s4 + $0x20] sm:$0xff] %v298_v52  ;;  %v270_v54 = vmul.f32 %v500_v15, %v198_v53  ;;  %v208_v55 = vpop.f32.mrf.mxu3 }
  0xb6   :  { %v274_v56 = vmul.f32 %v500_v15, %v208_v55  ;;  %v190_v57 = vpop.f32.mrf.mxu1 }
  0xb7   :  { %v288_v58 = vadd.f32 %v505_v16, %v270_v54  ;;  %v267_v59 = vmul.f32 %v500_v15, %v190_v57 }
  0xb8   :  { %v292_v60 = vadd.f32 %v505_v16, %v274_v56 }
  0xb9   :  { %v302_v61 = vmax.f32 %v288_v58, 0.0  ;;  %v285_v62 = vadd.f32 %v505_v16, %v267_v59 }
  0xba   :  { %v306_v63 = vmax.f32 %v292_v60, 0.0 }
  0xbb   :  { %316 = vst [vmem:[%s581_s4 + $0x40] sm:$0xff] %v302_v61  ;;  %v299_v0 = vmax.f32 %v285_v62, 0.0 }
  0xbc   :  { %320 = vst [vmem:[%s581_s4 + $0x60] sm:$0xff] %v306_v63  ;;  %v200_v1 = vpop.f32.mrf.mxu2 }
  0xbd   :  { %313 = vst [vmem:[%s581_s4 + $0x28] sm:$0xff] %v299_v0  ;;  %v271_v2 = vmul.f32 %v500_v15, %v200_v1  ;;  %v210_v3 = vpop.f32.mrf.mxu3 }
  0xbe   :  { %v275_v4 = vmul.f32 %v500_v15, %v210_v3 }
  0xbf   :  { %v289_v5 = vadd.f32 %v505_v16, %v271_v2 }
  0xc0   :  { %v293_v6 = vadd.f32 %v505_v16, %v275_v4 }
  0xc1   :  { %v303_v7 = vmax.f32 %v289_v5, 0.0 }
  0xc2   :  { %v307_v8 = vmax.f32 %v293_v6, 0.0 }
  0xc3   :  { %317 = vst [vmem:[%s581_s4 + $0x48] sm:$0xff] %v303_v7 }
  0xc4   :  { %321 = vst [vmem:[%s581_s4 + $0x68] sm:$0xff] %v307_v8 }

</bundles_post_ra>
